<compile_context>
chip_gen: v7x
topology: tpu7x:2x2x1
jax: 0.10.0
libtpu: 0.0.40
codegen_flags: <defaults>
</compile_context>

<pallas_src>
import jax
import jax.numpy as jnp
from jax.experimental import pallas as pl
from jax.experimental.pallas import tpu as pltpu


def _round_up(n: int, m: int) -> int:
    return ((n + m - 1) // m) * m


def _make_embedding_kernel(layer_dims, epilogue_dtype):
    """layer_dims: [(in_dim, out_dim), ...]; layer 0 = NormalBlock, rest = ResBlocks."""
    n_layers = len(layer_dims)

    def kernel(*refs):
        x_ref = refs[0]
        w_refs = refs[1:1 + n_layers]
        b_refs = refs[1 + n_layers:1 + 2 * n_layers]
        dt_ref = refs[1 + 2 * n_layers]          # SMEM (n_res,) f32
        o_ref = refs[1 + 2 * n_layers + 1]

        # --- NormalBlock(1 -> n0): K == 1, so broadcast-mul on the VPU ---
        x = x_ref[...]                                            # (TB, 1) f32
        h = jnp.tanh(x * w_refs[0][...] + b_refs[0][...])         # (TB, n0) f32

        # --- ResBlocks: MXU matmul (bf16 operands, f32 accumulate) + f32 epilogue ---
        for li in range(1, n_layers):
            in_d, out_d = layer_dims[li]
            rhs = w_refs[li][...]                                 # pre-cast in wrapper
            lhs = h.astype(rhs.dtype)
            acc = jnp.dot(lhs, rhs, preferred_element_type=jnp.float32)
            pre = acc + b_refs[li][...]
            if epilogue_dtype != jnp.float32:
                # v6e/v7x optional fast path (do NOT use on v5e: no bf16 EUP/VPU).
                feat = jnp.tanh(pre.astype(epilogue_dtype)).astype(jnp.float32)
            else:
                feat = jnp.tanh(pre)
            if in_d * 2 == out_d:
                identity = jnp.concatenate([h, h], axis=-1)       # torch.cat([x, x], dim=1)
            else:                                                 # in_d == out_d (asserted)
                identity = h
            h = dt_ref[li - 1] * feat + identity                  # dt * features + identity

        o_ref[...] = h.astype(o_ref.dtype)

    return kernel


def embedding_net_forward(x, weights, biases, dts, *, block_b=1024,
                          compute_dtype=jnp.bfloat16,
                          epilogue_dtype=jnp.float32,
                          out_dtype=None):
    """Fused EmbeddingNet forward.

    x:       (B, 1) float32
    weights: list of (in_i, out_i) float32 arrays (PyTorch (out,in) transposed once
             at parameter-build time, outside the hot path)
    biases:  list of (1, out_i) float32 arrays
    dts:     (n_layers - 1,) float32 ResBlock dt scalars
    """
    B = x.shape[0]
    n_layers = len(weights)
    layer_dims = [tuple(w.shape) for w in weights]
    n_out = layer_dims[-1][1]
    out_dtype = x.dtype if out_dtype is None else out_dtype

    assert layer_dims[0][0] == 1, "NormalBlock input dim must be 1"
    for in_d, out_d in layer_dims[1:]:
        # Mirrors the PyTorch ResBlock assertion (only these two cases are legal).
        assert in_d == out_d or in_d * 2 == out_d, (
            f"ResBlock dims must satisfy out == in or out == 2*in, got {in_d}->{out_d}")

    # --- batch tiling (overhead-aware) ---
    if B <= 2048:
        tb = _round_up(max(B, 8), 8)     # one grid step; padded rows discarded
        grid = (1,)
    else:
        tb = _round_up(min(block_b, B), 8)
        grid = (pl.cdiv(B, tb),)

    # --- one-time parameter prep (outside the kernel / grid loop) ---
    # First layer stays f32 (tiny, feeds the VPU broadcast-mul); ResBlock weights
    # are cast to the MXU compute dtype once here.
    all_weights = [weights[0].astype(jnp.float32)] + \
                  [w.astype(compute_dtype) for w in weights[1:]]
    all_biases = [b.astype(jnp.float32) for b in biases]
    dts_smem = (dts.astype(jnp.float32) if dts.shape[0] > 0
                else jnp.zeros((1,), jnp.float32))

    in_specs = [pl.BlockSpec((tb, 1), lambda i: (i, 0))]
    # Constant index_maps -> weights/biases stay VMEM-resident across batch tiles.
    for w in all_weights:
        in_specs.append(pl.BlockSpec(w.shape, lambda i: (0, 0)))
    for b in all_biases:
        in_specs.append(pl.BlockSpec(b.shape, lambda i: (0, 0)))
    in_specs.append(pl.BlockSpec(memory_space=pltpu.MemorySpace.SMEM))

    out_spec = pl.BlockSpec((tb, n_out), lambda i: (i, 0))

    # Advisory cost estimate for the XLA scheduler.
    flops = 2 * B * 1 * layer_dims[0][1]
    transcendentals = B * layer_dims[0][1]
    for in_d, out_d in layer_dims[1:]:
        flops += 2 * B * in_d * out_d + 2 * B * out_d
        transcendentals += B * out_d
    bytes_accessed = (x.size * x.dtype.itemsize
                      + sum(w.size * w.dtype.itemsize for w in all_weights)
                      + sum(b.size * b.dtype.itemsize for b in all_biases)
                      + dts_smem.size * 4
                      + B * n_out * jnp.dtype(out_dtype).itemsize)

    kernel = _make_embedding_kernel(layer_dims, epilogue_dtype)

    return pl.pallas_call(
        kernel,
        out_shape=jax.ShapeDtypeStruct((B, n_out), out_dtype),
        grid_spec=pltpu.PrefetchScalarGridSpec(
            num_scalar_prefetch=0,
            grid=grid,
            in_specs=in_specs,
            out_specs=out_spec,
        ),
        compiler_params=pltpu.CompilerParams(
            dimension_semantics=("parallel",)),
        cost_estimate=pl.CostEstimate(
            flops=flops,
            transcendentals=transcendentals,
            bytes_accessed=bytes_accessed),
    )(x, *all_weights, *all_biases, dts_smem)


if __name__ == "__main__":
    key = jax.random.PRNGKey(0)

    # EmbeddingNet(neuron_list=[32, 64, 128], resnet_dt=True, activation='tanh')
    neuron_list = [32, 64, 128]      # doubling widths -> ResBlocks use cat([x, x]) identity
    batch = 256                      # small; B <= 2048 -> single grid step, tb = 256

    layer_dims = [(1, neuron_list[0])]
    for i in range(len(neuron_list) - 1):
        layer_dims.append((neuron_list[i], neuron_list[i + 1]))

    keys = jax.random.split(key, 2 * len(layer_dims) + 2)
    x = jax.random.normal(keys[0], (batch, 1), dtype=jnp.float32)

    weights, biases = [], []
    for li, (in_d, out_d) in enumerate(layer_dims):
        bound = 1.0 / (in_d ** 0.5)
        # nn.Linear stores (out, in); convert to (in, out) ONCE here, outside the hot path.
        w_pt = jax.random.uniform(keys[2 * li + 1], (out_d, in_d), jnp.float32, -bound, bound)
        b_pt = jax.random.uniform(keys[2 * li + 2], (out_d,), jnp.float32, -bound, bound)
        weights.append(jnp.asarray(w_pt.T))
        biases.append(b_pt.reshape(1, out_d))

    # ResBlock dt parameters. The PyTorch module leaves torch.FloatTensor(1)
    # uninitialized; use a deterministic DeepMD-style init ~ N(0.1, 0.001) here.
    n_res = len(layer_dims) - 1
    dts = 0.1 + 0.001 * jax.random.normal(keys[-1], (n_res,), dtype=jnp.float32)

    # Pure-JAX reference of the same forward pass.
    def ref_forward(x, weights, biases, dts):
        h = jnp.tanh(jnp.dot(x, weights[0], precision=jax.lax.Precision.HIGHEST) + biases[0])
        for i in range(1, len(weights)):
            in_d, out_d = weights[i].shape
            feat = jnp.tanh(jnp.dot(h, weights[i],
                                    precision=jax.lax.Precision.HIGHEST) + biases[i])
            identity = jnp.concatenate([h, h], axis=-1) if in_d * 2 == out_d else h
            h = dts[i - 1] * feat + identity
        return h

    ref = ref_forward(x, weights, biases, dts)

    # f32 MXU path (tolerance accounts for TPU f32 matmul pass decomposition).
    out_f32 = embedding_net_forward(x, weights, biases, dts, compute_dtype=jnp.float32)
    jax.block_until_ready(out_f32)
    assert out_f32.shape == ref.shape
    assert jnp.allclose(out_f32, ref, atol=5e-3, rtol=5e-3), "f32 kernel mismatch vs reference"

    # Default path: bf16 MXU operands (pre-cast once in the wrapper) with f32
    # accumulation and f32 epilogue; looser tolerance.
    out_bf16 = embedding_net_forward(x, weights, biases, dts)
    jax.block_until_ready(out_bf16)
    assert jnp.allclose(out_bf16, ref, atol=5e-2), "bf16 kernel mismatch vs reference"

    print("KERNEL_OK")
</pallas_src>

<mosaic_0001>
module attributes {stable_mosaic.version = 11 : i64} {
  func.func @kernel(%arg0: i32, %arg1: memref<256x1xf32, #tpu.memory_space<vmem>>, %arg2: memref<1x32xf32, #tpu.memory_space<vmem>>, %arg3: memref<32x64xf32, #tpu.memory_space<vmem>>, %arg4: memref<64x128xf32, #tpu.memory_space<vmem>>, %arg5: memref<1x32xf32, #tpu.memory_space<vmem>>, %arg6: memref<1x64xf32, #tpu.memory_space<vmem>>, %arg7: memref<1x128xf32, #tpu.memory_space<vmem>>, %arg8: memref<2xf32, #tpu.memory_space<smem>>, %arg9: memref<256x128xf32, #tpu.memory_space<vmem>>) attributes {dimension_semantics = [#tpu.dimension_semantics<parallel>], iteration_bounds = array<i64: 1>, scalar_prefetch = 0 : i64, scratch_operands = 0 : i64, tpu.core_type = #tpu.core_type<tc>, window_params = [{transform_indices = @transform_0, window_bounds = array<i64: 256, 1>}, {pipeline_mode = #tpu.pipeline_mode<synchronous>, transform_indices = @transform_1, window_bounds = array<i64: 1, 32>}, {pipeline_mode = #tpu.pipeline_mode<synchronous>, transform_indices = @transform_2, window_bounds = array<i64: 32, 64>}, {pipeline_mode = #tpu.pipeline_mode<synchronous>, transform_indices = @transform_3, window_bounds = array<i64: 64, 128>}, {pipeline_mode = #tpu.pipeline_mode<synchronous>, transform_indices = @transform_4, window_bounds = array<i64: 1, 32>}, {pipeline_mode = #tpu.pipeline_mode<synchronous>, transform_indices = @transform_5, window_bounds = array<i64: 1, 64>}, {pipeline_mode = #tpu.pipeline_mode<synchronous>, transform_indices = @transform_6, window_bounds = array<i64: 1, 128>}, {transform_indices = @transform_7, window_bounds = array<i64: 2>}, {transform_indices = @transform_8, window_bounds = array<i64: 256, 128>}]} {
    %c0 = arith.constant 0 : index
    %c0_0 = arith.constant 0 : index
    %0 = vector.load %arg1[%c0, %c0_0] : memref<256x1xf32, #tpu.memory_space<vmem>>, vector<256x1xf32>
    %c0_1 = arith.constant 0 : index
    %c0_2 = arith.constant 0 : index
    %1 = vector.load %arg2[%c0_1, %c0_2] : memref<1x32xf32, #tpu.memory_space<vmem>>, vector<1x32xf32>
    %2 = vector.broadcast %0 : vector<256x1xf32> to vector<256x32xf32>
    %3 = vector.broadcast %1 : vector<1x32xf32> to vector<256x32xf32>
    %4 = arith.mulf %2, %3 : vector<256x32xf32>
    %c0_3 = arith.constant 0 : index
    %c0_4 = arith.constant 0 : index
    %5 = vector.load %arg5[%c0_3, %c0_4] : memref<1x32xf32, #tpu.memory_space<vmem>>, vector<1x32xf32>
    %6 = vector.broadcast %5 : vector<1x32xf32> to vector<256x32xf32>
    %7 = arith.addf %4, %6 : vector<256x32xf32>
    %8 = math.tanh %7 : vector<256x32xf32>
    %c0_5 = arith.constant 0 : index
    %c0_6 = arith.constant 0 : index
    %9 = vector.load %arg3[%c0_5, %c0_6] : memref<32x64xf32, #tpu.memory_space<vmem>>, vector<32x64xf32>
    %cst = arith.constant dense<0.000000e+00> : vector<256x64xf32>
    %10 = tpu.matmul %8, %9, %cst {dimension_numbers = #tpu.dot_dimension_numbers<[1], [0], [0], [1], [0, 0, 1, 1], [], []>} : vector<256x32xf32>, vector<32x64xf32>, vector<256x64xf32> -> vector<256x64xf32>
    %c0_7 = arith.constant 0 : index
    %c0_8 = arith.constant 0 : index
    %11 = vector.load %arg6[%c0_7, %c0_8] : memref<1x64xf32, #tpu.memory_space<vmem>>, vector<1x64xf32>
    %12 = vector.broadcast %11 : vector<1x64xf32> to vector<256x64xf32>
    %13 = arith.addf %10, %12 : vector<256x64xf32>
    %14 = math.tanh %13 : vector<256x64xf32>
    %15 = tpu.concatenate %8, %8 in 1 : vector<256x32xf32>, vector<256x32xf32> -> vector<256x64xf32>
    %c0_9 = arith.constant 0 : index
    %16 = memref.load %arg8[%c0_9] : memref<2xf32, #tpu.memory_space<smem>>
    %17 = vector.broadcast %16 : f32 to vector<256x64xf32>
    %18 = arith.mulf %17, %14 : vector<256x64xf32>
    %19 = arith.addf %18, %15 : vector<256x64xf32>
    %c0_10 = arith.constant 0 : index
    %c0_11 = arith.constant 0 : index
    %20 = vector.load %arg4[%c0_10, %c0_11] : memref<64x128xf32, #tpu.memory_space<vmem>>, vector<64x128xf32>
    %cst_12 = arith.constant dense<0.000000e+00> : vector<256x128xf32>
    %21 = tpu.matmul %19, %20, %cst_12 {dimension_numbers = #tpu.dot_dimension_numbers<[1], [0], [0], [1], [0, 0, 1, 1], [], []>} : vector<256x64xf32>, vector<64x128xf32>, vector<256x128xf32> -> vector<256x128xf32>
    %c0_13 = arith.constant 0 : index
    %c0_14 = arith.constant 0 : index
    %22 = vector.load %arg7[%c0_13, %c0_14] : memref<1x128xf32, #tpu.memory_space<vmem>>, vector<1x128xf32>
    %23 = vector.broadcast %22 : vector<1x128xf32> to vector<256x128xf32>
    %24 = arith.addf %21, %23 : vector<256x128xf32>
    %25 = math.tanh %24 : vector<256x128xf32>
    %26 = tpu.concatenate %19, %19 in 1 : vector<256x64xf32>, vector<256x64xf32> -> vector<256x128xf32>
    %c1 = arith.constant 1 : index
    %27 = memref.load %arg8[%c1] : memref<2xf32, #tpu.memory_space<smem>>
    %28 = vector.broadcast %27 : f32 to vector<256x128xf32>
    %29 = arith.mulf %28, %25 : vector<256x128xf32>
    %30 = arith.addf %29, %26 : vector<256x128xf32>
    %c0_15 = arith.constant 0 : index
    %c0_16 = arith.constant 0 : index
    %31 = vector.load %arg9[%c0_15, %c0_16] : memref<256x128xf32, #tpu.memory_space<vmem>>, vector<256x128xf32>
    tpu.vector_store %arg9[%c0_15, %c0_16], %30 {strides = array<i32>} : memref<256x128xf32, #tpu.memory_space<vmem>>, vector<256x128xf32>,
    return
  }
  func.func @transform_0(%arg0: i32) -> (i32, i32) {
    %c0_i32 = arith.constant 0 : i32
    %c0_i32_0 = arith.constant 0 : i32
    return %arg0, %c0_i32 : i32, i32
  }
  func.func @transform_1(%arg0: i32) -> (i32, i32) {
    %c0_i32 = arith.constant 0 : i32
    %c0_i32_0 = arith.constant 0 : i32
    %c0_i32_1 = arith.constant 0 : i32
    return %c0_i32, %c0_i32_0 : i32, i32
  }
  func.func @transform_2(%arg0: i32) -> (i32, i32) {
    %c0_i32 = arith.constant 0 : i32
    %c0_i32_0 = arith.constant 0 : i32
    %c0_i32_1 = arith.constant 0 : i32
    return %c0_i32, %c0_i32_0 : i32, i32
  }
  func.func @transform_3(%arg0: i32) -> (i32, i32) {
    %c0_i32 = arith.constant 0 : i32
    %c0_i32_0 = arith.constant 0 : i32
    %c0_i32_1 = arith.constant 0 : i32
    return %c0_i32, %c0_i32_0 : i32, i32
  }
  func.func @transform_4(%arg0: i32) -> (i32, i32) {
    %c0_i32 = arith.constant 0 : i32
    %c0_i32_0 = arith.constant 0 : i32
    %c0_i32_1 = arith.constant 0 : i32
    return %c0_i32, %c0_i32_0 : i32, i32
  }
  func.func @transform_5(%arg0: i32) -> (i32, i32) {
    %c0_i32 = arith.constant 0 : i32
    %c0_i32_0 = arith.constant 0 : i32
    %c0_i32_1 = arith.constant 0 : i32
    return %c0_i32, %c0_i32_0 : i32, i32
  }
  func.func @transform_6(%arg0: i32) -> (i32, i32) {
    %c0_i32 = arith.constant 0 : i32
    %c0_i32_0 = arith.constant 0 : i32
    %c0_i32_1 = arith.constant 0 : i32
    return %c0_i32, %c0_i32_0 : i32, i32
  }
  func.func @transform_7(%arg0: i32) -> i32 {
    %c0_i32 = arith.constant 0 : i32
    %c0_i32_0 = arith.constant 0 : i32
    return %c0_i32 : i32
  }
  func.func @transform_8(%arg0: i32) -> (i32, i32) {
    %c0_i32 = arith.constant 0 : i32
    %c0_i32_0 = arith.constant 0 : i32
    return %arg0, %c0_i32 : i32, i32
  }
}

</mosaic_0001>

<bundles_post_ra>
// kernel: tpu_custom_call.1
= control target key start
LH: loop header
LB: loop body
LE: loop exit
PB: predicated region body
PF: predicated region fallthrough
CT: control target
= control target key end

     0   :  { %13 = vsyncpa [#allocation4], 0  ;;  %s3102_s0 = inlined_call_operand.vmem [shape: f32[256,1], index: 0, kind: input, shape index: {}]   ;;  %s3103_s1 = inlined_call_operand.vmem [shape: f32[1,32], index: 1, kind: input, shape index: {}]   ;;  %s3104_s2 = inlined_call_operand.vmem [shape: f32[32,64], index: 2, kind: input, shape index: {}]   ;;  %s3105_s3 = inlined_call_operand.vmem [shape: f32[64,128], index: 3, kind: input, shape index: {}]   ;;  %s3106_s4 = inlined_call_operand.vmem [shape: f32[1,32], index: 4, kind: input, shape index: {}]   ;;  %s3107_s5 = inlined_call_operand.vmem [shape: f32[1,64], index: 5, kind: input, shape index: {}]   ;;  %s3108_s6 = inlined_call_operand.vmem [shape: f32[1,128], index: 6, kind: input, shape index: {}]   ;;  %s3109_s7 = inlined_call_operand.vmem [shape: f32[2], index: 7, kind: input, shape index: {}]   ;;  %s3110_s8 = inlined_call_operand.hbm [shape: f32[256,128], index: 8, kind: output, shape index: {}]  }
   0x1   :  { %14 = vsyncpa [#allocation3], 0  ;;  %s35_s29 = sshll.u32 %s3109_s7, 4  ;;  %s36_s29 = int_to_ptr.vmem [resolvable:$true] %s35_s29 }
   0x2   :  { %s2014_s30 = scalar_lea.vmem %s36_s29, 16  ;;  %p2019_p1 = scmp.lt.s32.totalorder %s36_s29, %s36_s29 }
   0x3   :  { %p2015_p0 = scmp.ne.s32.totalorder %s36_s29, %s2014_s30  ;;  %p2020_p2 = scmp.lt.s32.totalorder %s2014_s30, %s2014_s30 }
   0x5   :  { %p2021_p3 = por %p2020_p2, %p2019_p1 }
   0x7   :  { %p2022_p4 = pnand %p2021_p3, %p2015_p0 }
   0x9   :  { %2025 = shalt.err (!%p2022_p4)
}
   0xa   :  { %s2052_s9 = smov [#allocation2]  }
   0xb   :  { %38 = dma.vmem_to_smem %s36_s29, 16, %s2052_s9, [#allocation4]  }
   0xc   :  { %2048 = dma.done.wait [#allocation4], 16  }
   0xd   :  { %2049 = vsyncadd [#allocation4], 4294967280 }
   0xe   :  { %42 = sfence }
   0xf   :  { %v45_v0 = vld [vmem:[%s3102_s0 + $0x10] sm:$0xff]  ;;  %v43_v1 = vld [vmem:[%s3102_s0] sm:$0xff]  ;;  %v2053_v2 = vmov 0   ;;  %v46_v3 = vld [vmem:[%s3102_s0 + $0x18] sm:$0xff]  ;;  %vm356_vm0 = vcmask 261120   ;;  %s838_s28 = sld [smem:[#allocation2]] }
  0x10   :  { %1821 = vset.pattern.permute.xlu1 %v2053_v2  ;;  %1820 = vset.pattern.permute.xlu0 %v2053_v2  ;;  %v44_v4 = vld [vmem:[%s3102_s0 + $0x8] sm:$0xff]  ;;  %v47_v6 = vld [vmem:[%s3102_s0 + $0x20] sm:$0xff]  ;;  %v50_v7 = vld [vmem:[%s3102_s0 + $0x38] sm:$0xff]  ;;  %vm919_vm1 = vcmask 523264   ;;  %s1584_s9 = sld [smem:[#allocation2 + $0x1]] }
  0x11   :  { %88 = vperm.xlu1 %1821, %v45_v0   ;;  %78 = vperm.xlu0 %1820, %v43_v1   ;;  %v48_v5 = vld [vmem:[%s3102_s0 + $0x28] sm:$0xff]  ;;  %v49_v8 = vld [vmem:[%s3102_s0 + $0x30] sm:$0xff]  ;;  %v345_v9 = vld [vmem:[%s3104_s2] sm:$0xff] }
  0x12   :  { %v346_v10 = vld [vmem:[%s3104_s2 + $0x8] sm:$0xff]  ;;  %v51_v13 = vld [vmem:[%s3102_s0 + $0x40] sm:$0xff]  ;;  %v347_v14 = vld [vmem:[%s3104_s2 + $0x10] sm:$0xff] }
  0x13   :  { %v1781_v11 = vpack.c.bf16 %v346_v10, %v345_v9  ;;  %v52_v12 = vld [vmem:[%s3102_s0 + $0x48] sm:$0xff]  ;;  %v348_v15 = vld [vmem:[%s3104_s2 + $0x18] sm:$0xff]  ;;  %v53_v18 = vld [vmem:[%s3102_s0 + $0x50] sm:$0xff] }
  0x14   :  { %v1785_v16 = vpack.c.bf16 %v348_v15, %v347_v14  ;;  %v54_v17 = vld [vmem:[%s3102_s0 + $0x58] sm:$0xff]  ;;  %v56_v19 = vld [vmem:[%s3102_s0 + $0x68] sm:$0xff]  ;;  %v55_v20 = vld [vmem:[%s3102_s0 + $0x60] sm:$0xff] }
  0x15   :  { %93 = vperm.xlu1 %1821, %v46_v3   ;;  %83 = vperm.xlu0 %1820, %v44_v4   ;;  %v58_v21 = vld [vmem:[%s3102_s0 + $0x78] sm:$0xff]  ;;  %v57_v22 = vld [vmem:[%s3102_s0 + $0x70] sm:$0xff]  ;;  %v60_v23 = vld [vmem:[%s3102_s0 + $0x88] sm:$0xff] }
  0x16   :  { %1782 = vmatprep.subr.bf16.mxu0 %v1781_v11  ;;  %v59_v24 = vld [vmem:[%s3102_s0 + $0x80] sm:$0xff]  ;;  %v62_v25 = vld [vmem:[%s3102_s0 + $0x98] sm:$0xff]  ;;  %v61_v26 = vld [vmem:[%s3102_s0 + $0x90] sm:$0xff] }
  0x17   :  { %1784 = vmatpush3.bf16.msra.mxu0 %v1781_v11  ;;  %v64_v27 = vld [vmem:[%s3102_s0 + $0xa8] sm:$0xff]  ;;  %v63_v28 = vld [vmem:[%s3102_s0 + $0xa0] sm:$0xff]  ;;  %v66_v29 = vld [vmem:[%s3102_s0 + $0xb8] sm:$0xff] }
  0x18   :  { %1786 = vmatprep.subr.bf16.mxu0 %v1785_v16  ;;  %v65_v30 = vld [vmem:[%s3102_s0 + $0xb0] sm:$0xff]  ;;  %v68_v31 = vld [vmem:[%s3102_s0 + $0xc8] sm:$0xff]  ;;  %v67_v32 = vld [vmem:[%s3102_s0 + $0xc0] sm:$0xff] }
  0x19   :  { %103 = vperm.xlu1 %1821, %v48_v5   ;;  %98 = vperm.xlu0 %1820, %v47_v6   ;;  %v70_v33 = vld [vmem:[%s3102_s0 + $0xd8] sm:$0xff]  ;;  %v69_v34 = vld [vmem:[%s3102_s0 + $0xd0] sm:$0xff]  ;;  %v72_v35 = vld [vmem:[%s3102_s0 + $0xe8] sm:$0xff] }
  0x1a   :  { %v71_v36 = vld [vmem:[%s3102_s0 + $0xe0] sm:$0xff]  ;;  %v74_v37 = vld [vmem:[%s3102_s0 + $0xf8] sm:$0xff]  ;;  %v73_v38 = vld [vmem:[%s3102_s0 + $0xf0] sm:$0xff]  ;;  %s2054_s0 = smov 32  }
  0x1b   :  { %1788 = vmatpush3.bf16.msra.mxu0 %v1785_v16  ;;  %v2218_v39 = vld [vmem:[%s3103_s1] ss:$0 sm:$0xff] }
  0x1c   :  { %v2223_v40 = vld [vmem:[%s3106_s4] ss:$0 sm:$0xff] }
  0x1d   :  { %113 = vperm.xlu1 %1821, %v50_v7   ;;  %108 = vperm.xlu0 %1820, %v49_v8  }
  0x21   :  { %123 = vperm.xlu1 %1821, %v52_v12   ;;  %118 = vperm.xlu0 %1820, %v51_v13  }
  0x25   :  { %133 = vperm.xlu1 %1821, %v54_v17   ;;  %128 = vperm.xlu0 %1820, %v53_v18  }
  0x29   :  { %143 = vperm.xlu1 %1821, %v56_v19   ;;  %138 = vperm.xlu0 %1820, %v55_v20  }
  0x2d   :  { %153 = vperm.xlu1 %1821, %v58_v21   ;;  %148 = vperm.xlu0 %1820, %v57_v22  }
  0x31   :  { %163 = vperm.xlu1 %1821, %v60_v23   ;;  %158 = vperm.xlu0 %1820, %v59_v24  }
  0x35   :  { %173 = vperm.xlu1 %1821, %v62_v25   ;;  %168 = vperm.xlu0 %1820, %v61_v26  }
  0x39   :  { %183 = vperm.xlu1 %1821, %v64_v27   ;;  %178 = vperm.xlu0 %1820, %v63_v28  }
  0x3d   :  { %193 = vperm.xlu1 %1821, %v66_v29   ;;  %188 = vperm.xlu0 %1820, %v65_v30  }
  0x41   :  { %203 = vperm.xlu1 %1821, %v68_v31   ;;  %198 = vperm.xlu0 %1820, %v67_v32  }
  0x45   :  { %213 = vperm.xlu1 %1821, %v70_v33   ;;  %208 = vperm.xlu0 %1820, %v69_v34  }
  0x49   :  { %223 = vperm.xlu1 %1821, %v72_v35   ;;  %218 = vperm.xlu0 %1820, %v71_v36  }
  0x4d   :  { %233 = vperm.xlu1 %1821, %v74_v37   ;;  %228 = vperm.xlu0 %1820, %v73_v38  }
  0x90   :  { %v89_v41 = vpop.permute.xlu1 %88  ;;  %v79_v42 = vpop.permute.xlu0 %78 }
  0x91   :  { %v244_v43 = vmul.f32 %v2218_v39, %v89_v41  ;;  %v242_v44 = vmul.f32 %v2218_v39, %v79_v42 }
  0x93   :  { %v283_v45 = vadd.f32 %v2223_v40, %v244_v43  ;;  %v281_v46 = vadd.f32 %v2223_v40, %v242_v44 }
  0x94   :  { %v94_v47 = vpop.permute.xlu1 %93  ;;  %v84_v48 = vpop.permute.xlu0 %83 }
  0x95   :  { %1822 = vtanh.f32 %v283_v45  ;;  %v245_v49 = vmul.f32 %v2218_v39, %v94_v47  ;;  %v243_v50 = vmul.f32 %v2218_v39, %v84_v48 }
  0x96   :  { %1824 = vtanh.f32 %v281_v46 }
  0x97   :  { %v284_v51 = vadd.f32 %v2223_v40, %v245_v49  ;;  %v282_v52 = vadd.f32 %v2223_v40, %v243_v50 }
  0x98   :  { %v104_v53 = vpop.permute.xlu1 %103  ;;  %v99_v54 = vpop.permute.xlu0 %98 }
  0x99   :  { %1826 = vtanh.f32 %v284_v51  ;;  %v247_v55 = vmul.f32 %v2218_v39, %v104_v53  ;;  %v246_v56 = vmul.f32 %v2218_v39, %v99_v54 }
  0x9a   :  { %1828 = vtanh.f32 %v282_v52 }
  0x9b   :  { %v286_v57 = vadd.f32 %v2223_v40, %v247_v55  ;;  %v285_v58 = vadd.f32 %v2223_v40, %v246_v56 }
  0x9c   :  { %v114_v59 = vpop.permute.xlu1 %113  ;;  %v109_v60 = vpop.permute.xlu0 %108 }
  0x9d   :  { %1830 = vtanh.f32 %v286_v57  ;;  %v249_v61 = vmul.f32 %v2218_v39, %v114_v59  ;;  %v248_v62 = vmul.f32 %v2218_v39, %v109_v60 }
  0x9e   :  { %1832 = vtanh.f32 %v285_v58 }
  0x9f   :  { %v2239_v63 = vpop.eup %1822  ;;  %v288_v0 = vadd.f32 %v2223_v40, %v249_v61  ;;  %v287_v1 = vadd.f32 %v2223_v40, %v248_v62 }
  0xa0   :  { %v2243_v2 = vpop.eup %1824  ;;  %v124_v3 = vpop.permute.xlu1 %123  ;;  %714 = vrot.lane.b32.xlu0 %v2239_v63, %s2054_s0 }
  0xa1   :  { %v119_v4 = vpop.permute.xlu0 %118  ;;  %1834 = vtanh.f32 %v288_v0  ;;  %v251_v5 = vmul.f32 %v2218_v39, %v124_v3  ;;  %1669 = vmatprep.mubr.msk.f32.mxu0 %vm356_vm0, %v2243_v2 }
  0xa2   :  { %v250_v6 = vmul.f32 %v2218_v39, %v119_v4  ;;  %1836 = vtanh.f32 %v287_v1 }
  0xa3   :  { %v2251_v7 = vpop.eup %1826  ;;  %v290_v8 = vadd.f32 %v2223_v40, %v251_v5 }
  0xa4   :  { %v289_v9 = vadd.f32 %v2223_v40, %v250_v6  ;;  %v2255_v10 = vpop.eup %1828  ;;  %716 = vrot.lane.b32.xlu1 %v2251_v7, %s2054_s0  ;;  %v134_v11 = vpop.permute.xlu1 %133 }
  0xa5   :  { %v129_v12 = vpop.permute.xlu0 %128  ;;  %1838 = vtanh.f32 %v290_v8  ;;  %v253_v13 = vmul.f32 %v2218_v39, %v134_v11  ;;  %1670 = vmatmul.mubr.msk.f32.vlgmr.msra.gmra.mrb[0].mxu0 %vm356_vm0, %v2255_v10 }
  0xa6   :  { %v252_v14 = vmul.f32 %v2218_v39, %v129_v12  ;;  %1840 = vtanh.f32 %v289_v9  ;;  %1672 = vmatprep.mubr.msk.f32.mxu0 %vm356_vm0, %v2239_v63 }
  0xa7   :  { %v2265_v15 = vpop.eup %1830  ;;  %v292_v16 = vadd.f32 %v2223_v40, %v253_v13 }
  0xa8   :  { %v291_v17 = vadd.f32 %v2223_v40, %v252_v14  ;;  %v2269_v18 = vpop.eup %1832  ;;  %720 = vrot.lane.b32.xlu1 %v2265_v15, %s2054_s0  ;;  %v144_v19 = vpop.permute.xlu1 %143 }
  0xa9   :  { %v139_v20 = vpop.permute.xlu0 %138  ;;  %1842 = vtanh.f32 %v292_v16  ;;  %v255_v21 = vmul.f32 %v2218_v39, %v144_v19  ;;  %1673 = vmatmul.mubr.msk.f32.gmra.mrb[2].mxu0 %vm356_vm0, %v2251_v7  ;;  %718 = vrot.lane.b32.xlu0 %v2269_v18, %s2054_s0 }
  0xaa   :  { %v254_v22 = vmul.f32 %v2218_v39, %v139_v20  ;;  %1844 = vtanh.f32 %v291_v17  ;;  %1675 = vmatprep.mubr.msk.f32.mxu0 %vm356_vm0, %v2269_v18 }
  0xab   :  { %v2281_v23 = vpop.eup %1834  ;;  %v294_v24 = vadd.f32 %v2223_v40, %v255_v21 }
  0xac   :  { %v293_v25 = vadd.f32 %v2223_v40, %v254_v22  ;;  %v2285_v26 = vpop.eup %1836  ;;  %724 = vrot.lane.b32.xlu1 %v2281_v23, %s2054_s0  ;;  %v154_v27 = vpop.permute.xlu1 %153 }
  0xad   :  { %v149_v28 = vpop.permute.xlu0 %148  ;;  %1846 = vtanh.f32 %v294_v24  ;;  %v257_v29 = vmul.f32 %v2218_v39, %v154_v27  ;;  %1676 = vmatmul.mubr.msk.f32.gmra.mrb[4].mxu0 %vm356_vm0, %v2265_v15  ;;  %722 = vrot.lane.b32.xlu0 %v2285_v26, %s2054_s0 }
  0xae   :  { %v256_v30 = vmul.f32 %v2218_v39, %v149_v28  ;;  %1848 = vtanh.f32 %v293_v25  ;;  %1678 = vmatprep.mubr.msk.f32.mxu0 %vm356_vm0, %v2285_v26 }
  0xaf   :  { %v2297_v31 = vpop.eup %1838  ;;  %v296_v32 = vadd.f32 %v2223_v40, %v257_v29 }
  0xb0   :  { %v295_v33 = vadd.f32 %v2223_v40, %v256_v30  ;;  %v2301_v34 = vpop.eup %1840  ;;  %728 = vrot.lane.b32.xlu1 %v2297_v31, %s2054_s0  ;;  %v164_v35 = vpop.permute.xlu1 %163 }
  0xb1   :  { %v159_v36 = vpop.permute.xlu0 %158  ;;  %1850 = vtanh.f32 %v296_v32  ;;  %v259_v37 = vmul.f32 %v2218_v39, %v164_v35  ;;  %1679 = vmatmul.mubr.msk.f32.gmra.mrb[6].mxu0 %vm356_vm0, %v2281_v23  ;;  %726 = vrot.lane.b32.xlu0 %v2301_v34, %s2054_s0 }
  0xb2   :  { %v258_v38 = vmul.f32 %v2218_v39, %v159_v36  ;;  %1852 = vtanh.f32 %v295_v33  ;;  %1681 = vmatprep.mubr.msk.f32.mxu0 %vm356_vm0, %v2301_v34 }
  0xb3   :  { %v2313_v41 = vpop.eup %1842  ;;  %v298_v42 = vadd.f32 %v2223_v40, %v259_v37 }
  0xb4   :  { %v297_v43 = vadd.f32 %v2223_v40, %v258_v38  ;;  %v2317_v44 = vpop.eup %1844  ;;  %732 = vrot.lane.b32.xlu1 %v2313_v41, %s2054_s0  ;;  %v174_v45 = vpop.permute.xlu1 %173 }
  0xb5   :  { %v169_v46 = vpop.permute.xlu0 %168  ;;  %1854 = vtanh.f32 %v298_v42  ;;  %v261_v47 = vmul.f32 %v2218_v39, %v174_v45  ;;  %1682 = vmatmul.mubr.msk.f32.gmra.mrb[8].mxu0 %vm356_vm0, %v2297_v31  ;;  %730 = vrot.lane.b32.xlu0 %v2317_v44, %s2054_s0 }
  0xb6   :  { %v260_v48 = vmul.f32 %v2218_v39, %v169_v46  ;;  %1856 = vtanh.f32 %v297_v43  ;;  %1684 = vmatprep.mubr.msk.f32.mxu0 %vm356_vm0, %v2317_v44 }
  0xb7   :  { %v2329_v49 = vpop.eup %1846  ;;  %v300_v50 = vadd.f32 %v2223_v40, %v261_v47 }
  0xb8   :  { %v299_v51 = vadd.f32 %v2223_v40, %v260_v48  ;;  %v2333_v52 = vpop.eup %1848  ;;  %736 = vrot.lane.b32.xlu1 %v2329_v49, %s2054_s0  ;;  %v184_v53 = vpop.permute.xlu1 %183 }
  0xb9   :  { %v179_v54 = vpop.permute.xlu0 %178  ;;  %1858 = vtanh.f32 %v300_v50  ;;  %v263_v55 = vmul.f32 %v2218_v39, %v184_v53  ;;  %1685 = vmatmul.mubr.msk.f32.gmra.mrb[10].mxu0 %vm356_vm0, %v2313_v41  ;;  %734 = vrot.lane.b32.xlu0 %v2333_v52, %s2054_s0 }
  0xba   :  { %v262_v56 = vmul.f32 %v2218_v39, %v179_v54  ;;  %1860 = vtanh.f32 %v299_v51  ;;  %1687 = vmatprep.mubr.msk.f32.mxu0 %vm356_vm0, %v2333_v52 }
  0xbb   :  { %v2345_v57 = vpop.eup %1850  ;;  %v302_v58 = vadd.f32 %v2223_v40, %v263_v55 }
  0xbc   :  { %v301_v59 = vadd.f32 %v2223_v40, %v262_v56  ;;  %v2349_v60 = vpop.eup %1852  ;;  %740 = vrot.lane.b32.xlu1 %v2345_v57, %s2054_s0  ;;  %v194_v61 = vpop.permute.xlu1 %193 }
  0xbd   :  { %v189_v62 = vpop.permute.xlu0 %188  ;;  %1862 = vtanh.f32 %v302_v58  ;;  %v265_v0 = vmul.f32 %v2218_v39, %v194_v61  ;;  %1688 = vmatmul.mubr.msk.f32.gmra.mrb[12].mxu0 %vm356_vm0, %v2329_v49  ;;  %738 = vrot.lane.b32.xlu0 %v2349_v60, %s2054_s0  ;;  %v904_v58 = vld [vmem:[%s3105_s3] sm:$0xff] }
  0xbe   :  { %v264_v1 = vmul.f32 %v2218_v39, %v189_v62  ;;  %1864 = vtanh.f32 %v301_v59  ;;  %1690 = vmatprep.mubr.msk.f32.mxu0 %vm356_vm0, %v2349_v60  ;;  %v905_v59 = vld [vmem:[%s3105_s3 + $0x8] sm:$0xff]  ;;  %v906_v62 = vld [vmem:[%s3105_s3 + $0x10] sm:$0xff] }
  0xbf   :  { %v2361_v3 = vpop.eup %1854  ;;  %v304_v4 = vadd.f32 %v2223_v40, %v265_v0  ;;  %v1789_v61 = vpack.c.bf16 %v905_v59, %v904_v58  ;;  %v907_v0 = vld [vmem:[%s3105_s3 + $0x18] sm:$0xff] }
  0xc0   :  { %v303_v5 = vadd.f32 %v2223_v40, %v264_v1  ;;  %v2365_v6 = vpop.eup %1856  ;;  %744 = vrot.lane.b32.xlu1 %v2361_v3, %s2054_s0  ;;  %v204_v8 = vpop.permute.xlu1 %203  ;;  %v1793_v1 = vpack.c.bf16 %v907_v0, %v906_v62 }
  0xc1   :  { %v199_v9 = vpop.permute.xlu0 %198  ;;  %1866 = vtanh.f32 %v304_v4  ;;  %v267_v11 = vmul.f32 %v2218_v39, %v204_v8  ;;  %1691 = vmatmul.mubr.msk.f32.gmra.mrb[14].mxu0 %vm356_vm0, %v2345_v57  ;;  %742 = vrot.lane.b32.xlu0 %v2365_v6, %s2054_s0  ;;  %v908_v4 = vld [vmem:[%s3105_s3 + $0x20] sm:$0xff] }
  0xc2   :  { %v266_v12 = vmul.f32 %v2218_v39, %v199_v9  ;;  %1868 = vtanh.f32 %v303_v5  ;;  %1693 = vmatprep.mubr.msk.f32.mxu0 %vm356_vm0, %v2365_v6  ;;  %1790 = vmatprep.subr.bf16.mxu0 %v1789_v61  ;;  %v909_v5 = vld [vmem:[%s3105_s3 + $0x28] sm:$0xff]  ;;  %v910_v9 = vld [vmem:[%s3105_s3 + $0x30] sm:$0xff] }
  0xc3   :  { %v2377_v13 = vpop.eup %1858  ;;  %v306_v14 = vadd.f32 %v2223_v40, %v267_v11  ;;  %1805 = vmatprep.subr.bf16.mxu1 %v1789_v61  ;;  %1792 = vmatpush3.bf16.msra.mxu0 %v1789_v61  ;;  %v1797_v8 = vpack.c.bf16 %v909_v5, %v908_v4  ;;  %v911_v11 = vld [vmem:[%s3105_s3 + $0x38] sm:$0xff] }
  0xc4   :  { %v305_v16 = vadd.f32 %v2223_v40, %v266_v12  ;;  %v2381_v17 = vpop.eup %1860  ;;  %748 = vrot.lane.b32.xlu1 %v2377_v13, %s2054_s0  ;;  %v214_v19 = vpop.permute.xlu1 %213  ;;  %1809 = vmatpush3.bf16.msra.mxu1 %v1789_v61  ;;  %v1801_v12 = vpack.c.bf16 %v911_v11, %v910_v9 }
  0xc5   :  { %v209_v20 = vpop.permute.xlu0 %208  ;;  %1870 = vtanh.f32 %v306_v14  ;;  %v269_v21 = vmul.f32 %v2218_v39, %v214_v19  ;;  %1694 = vmatmul.mubr.msk.f32.gmra.mrb[16].mxu0 %vm356_vm0, %v2361_v3  ;;  %746 = vrot.lane.b32.xlu0 %v2381_v17, %s2054_s0 }
  0xc6   :  { %v268_v22 = vmul.f32 %v2218_v39, %v209_v20  ;;  %1872 = vtanh.f32 %v305_v16  ;;  %1696 = vmatprep.mubr.msk.f32.mxu0 %vm356_vm0, %v2381_v17  ;;  %1794 = vmatprep.subr.bf16.mxu0 %v1793_v1 }
  0xc7   :  { %v2393_v24 = vpop.eup %1862  ;;  %v308_v25 = vadd.f32 %v2223_v40, %v269_v21  ;;  %1806 = vmatprep.subr.bf16.mxu1 %v1793_v1  ;;  %1796 = vmatpush3.bf16.msra.mxu0 %v1793_v1 }
  0xc8   :  { %v307_v27 = vadd.f32 %v2223_v40, %v268_v22  ;;  %v2397_v28 = vpop.eup %1864  ;;  %752 = vrot.lane.b32.xlu1 %v2393_v24, %s2054_s0  ;;  %v224_v29 = vpop.permute.xlu1 %223  ;;  %1810 = vmatpush3.bf16.msra.mxu1 %v1793_v1 }
  0xc9   :  { %v219_v30 = vpop.permute.xlu0 %218  ;;  %1874 = vtanh.f32 %v308_v25  ;;  %v271_v32 = vmul.f32 %v2218_v39, %v224_v29  ;;  %1697 = vmatmul.mubr.msk.f32.gmra.mrb[18].mxu0 %vm356_vm0, %v2377_v13  ;;  %750 = vrot.lane.b32.xlu0 %v2397_v28, %s2054_s0 }
  0xca   :  { %v270_v33 = vmul.f32 %v2218_v39, %v219_v30  ;;  %1876 = vtanh.f32 %v307_v27  ;;  %1699 = vmatprep.mubr.msk.f32.mxu0 %vm356_vm0, %v2397_v28  ;;  %1798 = vmatprep.subr.bf16.mxu0 %v1797_v8 }
  0xcb   :  { %v2409_v35 = vpop.eup %1866  ;;  %v310_v36 = vadd.f32 %v2223_v40, %v271_v32  ;;  %1807 = vmatprep.subr.bf16.mxu1 %v1797_v8  ;;  %1800 = vmatpush3.bf16.msra.mxu0 %v1797_v8 }
  0xcc   :  { %v309_v37 = vadd.f32 %v2223_v40, %v270_v33  ;;  %v2413_v38 = vpop.eup %1868  ;;  %756 = vrot.lane.b32.xlu1 %v2409_v35, %s2054_s0  ;;  %v234_v42 = vpop.permute.xlu1 %233  ;;  %1811 = vmatpush3.bf16.msra.mxu1 %v1797_v8 }
  0xcd   :  { %v229_v43 = vpop.permute.xlu0 %228  ;;  %1878 = vtanh.f32 %v310_v36  ;;  %v273_v45 = vmul.f32 %v2218_v39, %v234_v42  ;;  %1700 = vmatmul.mubr.msk.f32.gmra.mrb[20].mxu0 %vm356_vm0, %v2393_v24  ;;  %754 = vrot.lane.b32.xlu0 %v2413_v38, %s2054_s0 }
  0xce   :  { %v272_v46 = vmul.f32 %v2218_v39, %v229_v43  ;;  %1880 = vtanh.f32 %v309_v37  ;;  %1702 = vmatprep.mubr.msk.f32.mxu0 %vm356_vm0, %v2413_v38  ;;  %1802 = vmatprep.subr.bf16.mxu0 %v1801_v12 }
  0xcf   :  { %v2425_v47 = vpop.eup %1870  ;;  %v312_v48 = vadd.f32 %v2223_v40, %v273_v45  ;;  %1808 = vmatprep.subr.bf16.mxu1 %v1801_v12  ;;  %1804 = vmatpush3.bf16.msra.mxu0 %v1801_v12  ;;  %v2538_v45 = vld [vmem:[%s3107_s5] ss:$0 sm:$0xff]  ;;  %s2055_s5 = smov 64  }
  0xd0   :  { %v311_v50 = vadd.f32 %v2223_v40, %v272_v46  ;;  %v2429_v51 = vpop.eup %1872  ;;  %760 = vrot.lane.b32.xlu1 %v2425_v47, %s2054_s0  ;;  %1812 = vmatpush3.bf16.msra.mxu1 %v1801_v12 }
  0xd1   :  { %1703 = vmatmul.mubr.msk.f32.gmra.mrb[22].mxu0 %vm356_vm0, %v2409_v35  ;;  %758 = vrot.lane.b32.xlu0 %v2429_v51, %s2054_s0 }
  0xd2   :  { %1882 = vtanh.f32 %v311_v50  ;;  %1705 = vmatprep.mubr.msk.f32.mxu0 %vm356_vm0, %v2429_v51 }
  0xd3   :  { %v2439_v39 = vpop.eup %1874  ;;  %1884 = vtanh.f32 %v312_v48 }
  0xd4   :  { %v2441_v53 = vpop.eup %1876  ;;  %764 = vrot.lane.b32.xlu1 %v2439_v39, %s2054_s0 }
  0xd5   :  { %3116 = vst [vmem:[#allocation8_spill] sm:$0xff] %v2441_v53  ;;  %1706 = vmatmul.mubr.msk.f32.gmra.mrb[24].mxu0 %vm356_vm0, %v2425_v47  ;;  %762 = vrot.lane.b32.xlu0 %v2441_v53, %s2054_s0 }
  0xd6   :  { %1708 = vmatprep.mubr.msk.f32.mxu0 %vm356_vm0, %v2441_v53 }
  0xd7   :  { %v2451_v40 = vpop.eup %1878 }
  0xd8   :  { %3117 = vst [vmem:[#allocation9_spill] sm:$0xff] %v2451_v40  ;;  %v2453_v54 = vpop.eup %1880  ;;  %768 = vrot.lane.b32.xlu1 %v2451_v40, %s2054_s0 }
  0xd9   :  { %3118 = vst [vmem:[#allocation10_spill] sm:$0xff] %v2453_v54  ;;  %1709 = vmatmul.mubr.msk.f32.gmra.mrb[26].mxu0 %vm356_vm0, %v2439_v39  ;;  %766 = vrot.lane.b32.xlu0 %v2453_v54, %s2054_s0 }
  0xda   :  { %1711 = vmatprep.mubr.msk.f32.mxu0 %vm356_vm0, %v2453_v54 }
  0xdc   :  { %v2463_v55 = vpop.eup %1882 }
  0xdd   :  { %3119 = vst [vmem:[#allocation11_spill] sm:$0xff] %v2463_v55  ;;  %710 = vrot.lane.b32.xlu0 %v2243_v2, %s2054_s0  ;;  %1712 = vmatmul.mubr.msk.f32.gmra.mrb[28].mxu0 %vm356_vm0, %v2451_v40  ;;  %v2473_v56 = vpop.eup %1884 }
  0xde   :  { %770 = vrot.lane.b32.xlu1 %v2463_v55, %s2054_s0  ;;  %1714 = vmatprep.mubr.msk.f32.mxu0 %vm356_vm0, %v2463_v55  ;;  %3120 = vst [vmem:[#allocation12_spill] sm:$0xff] %v2473_v56 }
  0xe1   :  { %712 = vrot.lane.b32.xlu0 %v2255_v10, %s2054_s0  ;;  %1715 = vmatmul.mubr.msk.f32.gmra.mrb[30].mxu0 %vm356_vm0, %v2473_v56 }
  0xe2   :  { %772 = vrot.lane.b32.xlu1 %v2473_v56, %s2054_s0 }
 0x112   :  { %v2505_v14 = vpop.permute.xlu0 %714 }
 0x116   :  { %v717_v32 = vpop.permute.xlu1 %716 }
 0x11a   :  { %v2527_v36 = vpop.permute.xlu1 %720 }
 0x11b   :  { %v2507_v16 = vpop.permute.xlu0 %718 }
 0x11e   :  { %v2531_v42 = vpop.permute.xlu1 %724 }
 0x11f   :  { %v2509_v19 = vpop.permute.xlu0 %722 }
 0x122   :  { %v2540_v46 = vpop.permute.xlu1 %728 }
 0x123   :  { %v2511_v20 = vpop.permute.xlu0 %726 }
 0x126   :  { %v2546_v0 = vpop.permute.xlu1 %732 }
 0x127   :  { %v2513_v21 = vpop.permute.xlu0 %730 }
 0x12b   :  { %v2515_v22 = vpop.permute.xlu0 %734 }
 0x12f   :  { %v2517_v25 = vpop.permute.xlu0 %738 }
 0x133   :  { %v2519_v27 = vpop.permute.xlu0 %742 }
 0x137   :  { %v2521_v29 = vpop.permute.xlu0 %746 }
 0x13b   :  { %v2523_v30 = vpop.permute.xlu0 %750 }
 0x13f   :  { %v2525_v33 = vpop.permute.xlu0 %754 }
 0x143   :  { %v2529_v37 = vpop.permute.xlu0 %758 }
 0x147   :  { %v2533_v43 = vpop.permute.xlu0 %762 }
 0x148   :  { %3121 = vst [vmem:[#allocation13_spill] sm:$0xff] %v2533_v43 }
 0x14b   :  { %v2542_v48 = vpop.permute.xlu0 %766 }
 0x14c   :  { %3122 = vst [vmem:[#allocation14_spill] sm:$0xff] %v2542_v48 }
 0x14f   :  { %v711_v5 = vpop.permute.xlu0 %710 }
 0x150   :  { %v806_v54 = vsel %vm356_vm0, %v2243_v2, %v711_v5  ;;  %v808_v5 = vsel %vm356_vm0, %v2239_v63, %v2505_v14  ;;  %v811_v14 = vsel %vm356_vm0, %v2265_v15, %v2527_v36 }
 0x178   :  { %v1671_v50 = vpop.f32.mrb[0].mxu0 }
 0x179   :  { %v525_v58 = vadd.f32 %v1671_v50, %v2538_v45  ;;  %v519_v59 = vpop.f32.mrb[1].mxu0 }
 0x17a   :  { %v520_v61 = vadd.f32 %v2538_v45, %v519_v59  ;;  %v2554_v59 = vstv %s838_s28 }
 0x17b   :  { %1886 = vtanh.f32 %v525_v58  ;;  %v2552_v58 = vpop.permute.xlu1 %736 }
 0x17c   :  { %1888 = vtanh.f32 %v520_v61  ;;  %v1674_v62 = vpop.f32.mrb[2].mxu0  ;;  %v713_v61 = vpop.permute.xlu0 %712 }
 0x17d   :  { %v535_v1 = vadd.f32 %v1674_v62, %v2538_v45  ;;  %v529_v4 = vpop.f32.mrb[3].mxu0 }
 0x17e   :  { %v530_v8 = vadd.f32 %v2538_v45, %v529_v4 }
 0x17f   :  { %1890 = vtanh.f32 %v535_v1  ;;  %v2569_v43 = vpop.permute.xlu1 %740 }
 0x180   :  { %1892 = vtanh.f32 %v530_v8  ;;  %v1677_v9 = vpop.f32.mrb[4].mxu0 }
 0x181   :  { %v545_v11 = vadd.f32 %v1677_v9, %v2538_v45  ;;  %v539_v12 = vpop.f32.mrb[5].mxu0 }
 0x182   :  { %v540_v50 = vadd.f32 %v2538_v45, %v539_v12  ;;  %v807_v12 = vsel %vm356_vm0, %v2255_v10, %v713_v61 }
 0x183   :  { %1894 = vtanh.f32 %v545_v11 }
 0x184   :  { %1896 = vtanh.f32 %v540_v50  ;;  %v1680_v62 = vpop.f32.mrb[6].mxu0 }
 0x185   :  { %v1887_v55 = vpop.eup %1886  ;;  %v555_v56 = vadd.f32 %v1680_v62, %v2538_v45  ;;  %v549_v4 = vpop.f32.mrb[7].mxu0 }
 0x186   :  { %v1889_v1 = vpop.eup %1888  ;;  %v550_v8 = vadd.f32 %v2538_v45, %v549_v4  ;;  %v841_v9 = vmul.f32 %v1887_v55, %v2554_v59 }
 0x187   :  { %1898 = vtanh.f32 %v555_v56  ;;  %v840_v11 = vmul.f32 %v1889_v1, %v2554_v59  ;;  %v809_v56 = vsel %vm356_vm0, %v2251_v7, %v717_v32 }
 0x188   :  { %1900 = vtanh.f32 %v550_v8  ;;  %v1683_v50 = vpop.f32.mrb[8].mxu0  ;;  %v2564_v48 = vadd.f32 %v841_v9, %v807_v12 }
 0x189   :  { %v1891_v62 = vpop.eup %1890  ;;  %v565_v40 = vadd.f32 %v1683_v50, %v2538_v45  ;;  %v559_v4 = vpop.f32.mrb[9].mxu0  ;;  %v2567_v53 = vadd.f32 %v840_v11, %v806_v54  ;;  %v810_v50 = vsel %vm356_vm0, %v2269_v18, %v2507_v16  ;;  %v813_v16 = vsel %vm356_vm0, %v2281_v23, %v2531_v42 }
 0x18a   :  { %v1893_v55 = vpop.eup %1892  ;;  %v560_v10 = vadd.f32 %v2538_v45, %v559_v4  ;;  %1275 = vrot.lane.b32.xlu1 %v2564_v48, %s2055_s5  ;;  %v843_v2 = vmul.f32 %v1891_v62, %v2554_v59  ;;  %v2607_v62 = vpop.permute.xlu1 %744 }
 0x18b   :  { %1902 = vtanh.f32 %v565_v40  ;;  %1273 = vrot.lane.b32.xlu0 %v2567_v53, %s2055_s5  ;;  %1733 = vmatprep.mubr.msk.f32.mxu0 %vm919_vm1, %v2567_v53  ;;  %v842_v54 = vmul.f32 %v1893_v55, %v2554_v59 }
 0x18c   :  { %1904 = vtanh.f32 %v560_v10  ;;  %v1686_v61 = vpop.f32.mrb[10].mxu0  ;;  %1734 = vmatmul.mubr.msk.f32.vlgmr.msra.gmra.mrb[32].mxu0 %vm919_vm1, %v2564_v48  ;;  %v2587_v1 = vadd.f32 %v843_v2, %v809_v56 }
 0x18d   :  { %v1895_v7 = vpop.eup %1894  ;;  %v575_v40 = vadd.f32 %v1686_v61, %v2538_v45  ;;  %v569_v32 = vpop.f32.mrb[11].mxu0  ;;  %v2590_v8 = vadd.f32 %v842_v54, %v808_v5  ;;  %v812_v61 = vsel %vm356_vm0, %v2285_v26, %v2509_v19  ;;  %v815_v19 = vsel %vm356_vm0, %v2297_v31, %v2540_v46 }
 0x18e   :  { %v1897_v9 = vpop.eup %1896  ;;  %v570_v12 = vadd.f32 %v2538_v45, %v569_v32  ;;  %1279 = vrot.lane.b32.xlu1 %v2587_v1, %s2055_s5  ;;  %v845_v63 = vmul.f32 %v1895_v7, %v2554_v59 }
 0x18f   :  { %1906 = vtanh.f32 %v575_v40  ;;  %1736 = vmatprep.mubr.msk.f32.mxu1 %vm919_vm1, %v2590_v8  ;;  %1277 = vrot.lane.b32.xlu0 %v2590_v8, %s2055_s5  ;;  %v844_v11 = vmul.f32 %v1897_v9, %v2554_v59 }
 0x190   :  { %1908 = vtanh.f32 %v570_v12  ;;  %v1689_v4 = vpop.f32.mrb[12].mxu0  ;;  %1737 = vmatmul.mubr.msk.f32.vlgmr.msra.gmra.mrb[0].mxu1 %vm919_vm1, %v2587_v1  ;;  %v2611_v15 = vadd.f32 %v845_v63, %v811_v14  ;;  %v2638_v63 = vpop.permute.xlu1 %748 }
 0x191   :  { %v1899_v36 = vpop.eup %1898  ;;  %v585_v55 = vadd.f32 %v1689_v4, %v2538_v45  ;;  %v579_v10 = vpop.f32.mrb[13].mxu0  ;;  %v2614_v2 = vadd.f32 %v844_v11, %v810_v50  ;;  %v814_v50 = vsel %vm356_vm0, %v2301_v34, %v2511_v20  ;;  %v817_v20 = vsel %vm356_vm0, %v2313_v41, %v2546_v0 }
 0x192   :  { %v1901_v56 = vpop.eup %1900  ;;  %v580_v54 = vadd.f32 %v2538_v45, %v579_v10  ;;  %1283 = vrot.lane.b32.xlu1 %v2611_v15, %s2055_s5  ;;  %v847_v18 = vmul.f32 %v1899_v36, %v2554_v59 }
 0x193   :  { %1910 = vtanh.f32 %v585_v55  ;;  %1739 = vmatprep.mubr.msk.f32.mxu1 %vm919_vm1, %v2614_v2  ;;  %1281 = vrot.lane.b32.xlu0 %v2614_v2, %s2055_s5  ;;  %v846_v5 = vmul.f32 %v1901_v56, %v2554_v59 }
 0x194   :  { %1912 = vtanh.f32 %v580_v54  ;;  %v1692_v7 = vpop.f32.mrb[14].mxu0  ;;  %1740 = vmatmul.mubr.msk.f32.gmra.mrb[2].mxu1 %vm919_vm1, %v2611_v15  ;;  %v2633_v40 = vadd.f32 %v847_v18, %v813_v16  ;;  %v816_v16 = vsel %vm356_vm0, %v2317_v44, %v2513_v21  ;;  %v819_v21 = vsel %vm356_vm0, %v2329_v49, %v2552_v58 }
 0x195   :  { %v1903_v23 = vpop.eup %1902  ;;  %v595_v42 = vadd.f32 %v1692_v7, %v2538_v45  ;;  %v589_v32 = vpop.f32.mrb[15].mxu0  ;;  %v2636_v9 = vadd.f32 %v846_v5, %v812_v61 }
 0x196   :  { %v1905_v12 = vpop.eup %1904  ;;  %v590_v14 = vadd.f32 %v2538_v45, %v589_v32  ;;  %1287 = vrot.lane.b32.xlu1 %v2633_v40, %s2055_s5  ;;  %v849_v26 = vmul.f32 %v1903_v23, %v2554_v59  ;;  %v2677_v5 = vpop.permute.xlu1 %752 }
 0x197   :  { %1914 = vtanh.f32 %v595_v42  ;;  %1742 = vmatprep.mubr.msk.f32.mxu1 %vm919_vm1, %v2636_v9  ;;  %1285 = vrot.lane.b32.xlu0 %v2636_v9, %s2055_s5  ;;  %v848_v11 = vmul.f32 %v1905_v12, %v2554_v59 }
 0x198   :  { %1916 = vtanh.f32 %v590_v14  ;;  %v1695_v4 = vpop.f32.mrb[16].mxu0  ;;  %1743 = vmatmul.mubr.msk.f32.gmra.mrb[4].mxu1 %vm919_vm1, %v2633_v40  ;;  %v2657_v36 = vadd.f32 %v849_v26, %v815_v19  ;;  %v818_v26 = vsel %vm356_vm0, %v2333_v52, %v2515_v22  ;;  %v821_v22 = vsel %vm356_vm0, %v2345_v57, %v2569_v43 }
 0x199   :  { %v1907_v31 = vpop.eup %1906  ;;  %v605_v46 = vadd.f32 %v1695_v4, %v2538_v45  ;;  %v599_v55 = vpop.f32.mrb[17].mxu0  ;;  %v2660_v10 = vadd.f32 %v848_v11, %v814_v50 }
 0x19a   :  { %v1909_v56 = vpop.eup %1908  ;;  %v600_v54 = vadd.f32 %v2538_v45, %v599_v55  ;;  %1291 = vrot.lane.b32.xlu1 %v2657_v36, %s2055_s5  ;;  %v851_v34 = vmul.f32 %v1907_v31, %v2554_v59 }
 0x19b   :  { %1918 = vtanh.f32 %v605_v46  ;;  %1745 = vmatprep.mubr.msk.f32.mxu1 %vm919_vm1, %v2660_v10  ;;  %1289 = vrot.lane.b32.xlu0 %v2660_v10, %s2055_s5  ;;  %v850_v18 = vmul.f32 %v1909_v56, %v2554_v59  ;;  %v2708_v46 = vpop.permute.xlu1 %756 }
 0x19c   :  { %1920 = vtanh.f32 %v600_v54  ;;  %v1698_v61 = vpop.f32.mrb[18].mxu0  ;;  %1746 = vmatmul.mubr.msk.f32.gmra.mrb[6].mxu1 %vm919_vm1, %v2657_v36  ;;  %v2681_v41 = vadd.f32 %v851_v34, %v817_v20  ;;  %v820_v54 = vsel %vm356_vm0, %v2349_v60, %v2517_v25  ;;  %v823_v25 = vsel %vm356_vm0, %v2361_v3, %v2607_v62 }
 0x19d   :  { %v1911_v0 = vpop.eup %1910  ;;  %v615_v7 = vadd.f32 %v1698_v61, %v2538_v45  ;;  %v609_v23 = vpop.f32.mrb[19].mxu0  ;;  %v2684_v42 = vadd.f32 %v850_v18, %v816_v16 }
 0x19e   :  { %v1913_v32 = vpop.eup %1912  ;;  %v610_v12 = vadd.f32 %v2538_v45, %v609_v23  ;;  %1295 = vrot.lane.b32.xlu1 %v2681_v41, %s2055_s5  ;;  %v853_v44 = vmul.f32 %v1911_v0, %v2554_v59  ;;  %v822_v23 = vsel %vm356_vm0, %v2365_v6, %v2519_v27  ;;  %v825_v27 = vsel %vm356_vm0, %v2377_v13, %v2638_v63 }
 0x19f   :  { %1922 = vtanh.f32 %v615_v7  ;;  %1748 = vmatprep.mubr.msk.f32.mxu1 %vm919_vm1, %v2684_v42  ;;  %1293 = vrot.lane.b32.xlu0 %v2684_v42, %s2055_s5  ;;  %v852_v14 = vmul.f32 %v1913_v32, %v2554_v59  ;;  %v2747_v32 = vpop.permute.xlu1 %760 }
 0x1a0   :  { %1924 = vtanh.f32 %v610_v12  ;;  %v1701_v19 = vpop.f32.mrb[20].mxu0  ;;  %1749 = vmatmul.mubr.msk.f32.gmra.mrb[8].mxu1 %vm919_vm1, %v2681_v41  ;;  %v2703_v11 = vadd.f32 %v853_v44, %v819_v21 }
 0x1a1   :  { %v1915_v49 = vpop.eup %1914  ;;  %v625_v58 = vadd.f32 %v1701_v19, %v2538_v45  ;;  %v619_v50 = vpop.f32.mrb[21].mxu0  ;;  %v2706_v4 = vadd.f32 %v852_v14, %v818_v26 }
 0x1a2   :  { %v1917_v31 = vpop.eup %1916  ;;  %v620_v55 = vadd.f32 %v2538_v45, %v619_v50  ;;  %1299 = vrot.lane.b32.xlu1 %v2703_v11, %s2055_s5  ;;  %v855_v52 = vmul.f32 %v1915_v49, %v2554_v59 }
 0x1a3   :  { %1926 = vtanh.f32 %v625_v58  ;;  %1751 = vmatprep.mubr.msk.f32.mxu1 %vm919_vm1, %v2706_v4  ;;  %1297 = vrot.lane.b32.xlu0 %v2706_v4, %s2055_s5  ;;  %v854_v56 = vmul.f32 %v1917_v31, %v2554_v59  ;;  %v824_v58 = vsel %vm356_vm0, %v2381_v17, %v2521_v29  ;;  %v827_v29 = vsel %vm356_vm0, %v2393_v24, %v2677_v5 }
 0x1a4   :  { %1928 = vtanh.f32 %v620_v55  ;;  %v1704_v34 = vpop.f32.mrb[22].mxu0  ;;  %1752 = vmatmul.mubr.msk.f32.gmra.mrb[10].mxu1 %vm919_vm1, %v2703_v11  ;;  %v2727_v20 = vadd.f32 %v855_v52, %v821_v22 }
 0x1a5   :  { %v1919_v57 = vpop.eup %1918  ;;  %v635_v43 = vadd.f32 %v1704_v34, %v2538_v45  ;;  %v629_v18 = vpop.f32.mrb[23].mxu0  ;;  %v2730_v16 = vadd.f32 %v854_v56, %v820_v54 }
 0x1a6   :  { %v1921_v61 = vpop.eup %1920  ;;  %v630_v0 = vadd.f32 %v2538_v45, %v629_v18  ;;  %1303 = vrot.lane.b32.xlu1 %v2727_v20, %s2055_s5  ;;  %v857_v60 = vmul.f32 %v1919_v57, %v2554_v59  ;;  %v765_v56 = vpop.permute.xlu1 %764  ;;  %v826_v57 = vsel %vm356_vm0, %v2397_v28, %v2523_v30  ;;  %v829_v30 = vsel %vm356_vm0, %v2409_v35, %v2708_v46 }
 0x1a7   :  { %1930 = vtanh.f32 %v635_v43  ;;  %1754 = vmatprep.mubr.msk.f32.mxu1 %vm919_vm1, %v2730_v16  ;;  %1301 = vrot.lane.b32.xlu0 %v2730_v16, %s2055_s5  ;;  %v856_v7 = vmul.f32 %v1921_v61, %v2554_v59 }
 0x1a8   :  { %1932 = vtanh.f32 %v630_v0  ;;  %v1707_v12 = vpop.f32.mrb[24].mxu0  ;;  %1755 = vmatmul.mubr.msk.f32.gmra.mrb[12].mxu1 %vm919_vm1, %v2727_v20  ;;  %v2751_v3 = vadd.f32 %v857_v60, %v823_v25 }
 0x1a9   :  { %v1923_v62 = vpop.eup %1922  ;;  %v645_v44 = vadd.f32 %v1707_v12, %v2538_v45  ;;  %v639_v21 = vpop.f32.mrb[25].mxu0  ;;  %v2754_v14 = vadd.f32 %v856_v7, %v822_v23  ;;  %v828_v23 = vsel %vm356_vm0, %v2413_v38, %v2525_v33  ;;  %v831_v33 = vsel %vm356_vm0, %v2425_v47, %v2747_v32 }
 0x1aa   :  { %v1925_v26 = vpop.eup %1924  ;;  %v640_v19 = vadd.f32 %v2538_v45, %v639_v21  ;;  %1307 = vrot.lane.b32.xlu1 %v2751_v3, %s2055_s5  ;;  %v859_v6 = vmul.f32 %v1923_v62, %v2554_v59  ;;  %v769_v12 = vpop.permute.xlu1 %768 }
 0x1ab   :  { %1934 = vtanh.f32 %v645_v44  ;;  %1757 = vmatprep.mubr.msk.f32.mxu1 %vm919_vm1, %v2754_v14  ;;  %1305 = vrot.lane.b32.xlu0 %v2754_v14, %s2055_s5  ;;  %v858_v49 = vmul.f32 %v1925_v26, %v2554_v59 }
 0x1ac   :  { %1936 = vtanh.f32 %v640_v19  ;;  %v1710_v50 = vpop.f32.mrb[26].mxu0  ;;  %1758 = vmatmul.mubr.msk.f32.gmra.mrb[14].mxu1 %vm919_vm1, %v2751_v3  ;;  %v2773_v31 = vadd.f32 %v859_v6, %v825_v27 }
 0x1ad   :  { %v1927_v13 = vpop.eup %1926  ;;  %v655_v63 = vadd.f32 %v1710_v50, %v2538_v45  ;;  %v649_v55 = vpop.f32.mrb[27].mxu0  ;;  %v2776_v52 = vadd.f32 %v858_v49, %v824_v58 }
 0x1ae   :  { %v1929_v22 = vpop.eup %1928  ;;  %v650_v54 = vadd.f32 %v2538_v45, %v649_v55  ;;  %1311 = vrot.lane.b32.xlu1 %v2773_v31, %s2055_s5  ;;  %v861_v17 = vmul.f32 %v1927_v13, %v2554_v59  ;;  %v771_v50 = vpop.permute.xlu1 %770  ;;  %v3124_v55 = vld [vmem:[#allocation8_spill] sm:$0xff] }
 0x1af   :  { %1938 = vtanh.f32 %v655_v63  ;;  %1760 = vmatprep.mubr.msk.f32.mxu1 %vm919_vm1, %v2776_v52  ;;  %1309 = vrot.lane.b32.xlu0 %v2776_v52, %s2055_s5  ;;  %v860_v34 = vmul.f32 %v1929_v22, %v2554_v59  ;;  %v833_v63 = vsel %vm356_vm0, %v2439_v39, %v765_v56 }
 0x1b0   :  { %1940 = vtanh.f32 %v650_v54  ;;  %v1713_v43 = vpop.f32.mrb[28].mxu0  ;;  %1761 = vmatmul.mubr.msk.f32.gmra.mrb[16].mxu1 %vm919_vm1, %v2773_v31  ;;  %v2795_v18 = vadd.f32 %v861_v17, %v827_v29 }
 0x1b1   :  { %v1931_v24 = vpop.eup %1930  ;;  %v665_v5 = vadd.f32 %v1713_v43, %v2538_v45  ;;  %v659_v61 = vpop.f32.mrb[29].mxu0  ;;  %v2798_v0 = vadd.f32 %v860_v34, %v826_v57  ;;  %v3125_v34 = vld [vmem:[#allocation9_spill] sm:$0xff] }
 0x1b2   :  { %v1933_v60 = vpop.eup %1932  ;;  %v660_v25 = vadd.f32 %v2538_v45, %v659_v61  ;;  %1315 = vrot.lane.b32.xlu1 %v2795_v18, %s2055_s5  ;;  %v863_v28 = vmul.f32 %v1931_v24, %v2554_v59  ;;  %v835_v57 = vsel %vm356_vm0, %v3125_v34, %v769_v12  ;;  %v3126_v24 = vld [vmem:[#allocation14_spill] sm:$0xff]  ;;  %v3128_v12 = vld [vmem:[#allocation12_spill] sm:$0xff] }
 0x1b3   :  { %1942 = vtanh.f32 %v665_v5  ;;  %1763 = vmatprep.mubr.msk.f32.mxu1 %vm919_vm1, %v2798_v0  ;;  %1313 = vrot.lane.b32.xlu0 %v2798_v0, %s2055_s5  ;;  %v862_v7 = vmul.f32 %v1933_v60, %v2554_v59  ;;  %v3127_v5 = vld [vmem:[#allocation10_spill] sm:$0xff]  ;;  %v773_v60 = vpop.permute.xlu1 %772 }
 0x1b4   :  { %1944 = vtanh.f32 %v660_v25  ;;  %v1716_v62 = vpop.f32.mrb[30].mxu0  ;;  %1764 = vmatmul.mubr.msk.f32.gmra.mrb[18].mxu1 %vm919_vm1, %v2795_v18  ;;  %v2817_v35 = vadd.f32 %v863_v28, %v829_v30  ;;  %v834_v61 = vsel %vm356_vm0, %v3127_v5, %v3126_v24 }
 0x1b5   :  { %v1935_v46 = vpop.eup %1934  ;;  %v675_v44 = vadd.f32 %v1716_v62, %v2538_v45  ;;  %v669_v21 = vpop.f32.mrb[31].mxu0  ;;  %v2820_v26 = vadd.f32 %v862_v7, %v828_v23  ;;  %v837_v62 = vsel %vm356_vm0, %v3128_v12, %v773_v60  ;;  %v2930_v60 = vstv %s1584_s9 }
 0x1b6   :  { %v1937_v19 = vpop.eup %1936  ;;  %v670_v6 = vadd.f32 %v2538_v45, %v669_v21  ;;  %1319 = vrot.lane.b32.xlu1 %v2817_v35, %s2055_s5  ;;  %v865_v38 = vmul.f32 %v1935_v46, %v2554_v59  ;;  %v830_v45 = vsel %vm356_vm0, %v2429_v51, %v2529_v37  ;;  %v3123_v37 = vld [vmem:[#allocation13_spill] sm:$0xff] }
 0x1b7   :  { %1946 = vtanh.f32 %v675_v44  ;;  %1766 = vmatprep.mubr.msk.f32.mxu1 %vm919_vm1, %v2820_v26  ;;  %1317 = vrot.lane.b32.xlu0 %v2820_v26, %s2055_s5  ;;  %v864_v27 = vmul.f32 %v1937_v19, %v2554_v59  ;;  %v832_v22 = vsel %vm356_vm0, %v3124_v55, %v3123_v37  ;;  %v3129_v44 = vld [vmem:[#allocation11_spill] sm:$0xff] }
 0x1b8   :  { %1948 = vtanh.f32 %v670_v6  ;;  %1767 = vmatmul.mubr.msk.f32.gmra.mrb[20].mxu1 %vm919_vm1, %v2817_v35  ;;  %v2839_v49 = vadd.f32 %v865_v38, %v831_v33  ;;  %v836_v21 = vsel %vm356_vm0, %v3129_v44, %v771_v50 }
 0x1b9   :  { %v1939_v47 = vpop.eup %1938  ;;  %v2841_v32 = vadd.f32 %v864_v27, %v830_v45 }
 0x1ba   :  { %v1941_v58 = vpop.eup %1940  ;;  %1323 = vrot.lane.b32.xlu1 %v2839_v49, %s2055_s5  ;;  %v867_v13 = vmul.f32 %v1939_v47, %v2554_v59 }
 0x1bb   :  { %1769 = vmatprep.mubr.msk.f32.mxu1 %vm919_vm1, %v2841_v32  ;;  %1321 = vrot.lane.b32.xlu0 %v2841_v32, %s2055_s5  ;;  %v866_v51 = vmul.f32 %v1941_v58, %v2554_v59  ;;  %v2914_v58 = vld [vmem:[%s3108_s6] ss:$0 sm:$0xff]  ;;  %s2056_s6 = smov [#allocation5]  }
 0x1bc   :  { %1770 = vmatmul.mubr.msk.f32.gmra.mrb[22].mxu1 %vm919_vm1, %v2839_v49  ;;  %v2858_v54 = vadd.f32 %v867_v13, %v833_v63  ;;  %s1504_s10 = sshll.u32 %s2056_s6, 4  ;;  %s1505_s10 = int_to_ptr.vmem [resolvable:$true] %s1504_s10 }
 0x1bd   :  { %v1943_v17 = vpop.eup %1942  ;;  %v2860_v29 = vadd.f32 %v866_v51, %v832_v22  ;;  %s2026_s11 = scalar_lea.vmem %s1505_s10, 4096  ;;  %p2031_p6 = scmp.lt.s32.totalorder %s1505_s10, %s1505_s10 }
 0x1be   :  { %v1945_v39 = vpop.eup %1944  ;;  %1327 = vrot.lane.b32.xlu1 %v2858_v54, %s2055_s5  ;;  %v869_v56 = vmul.f32 %v1943_v17, %v2554_v59  ;;  %p2027_p5 = scmp.ne.s32.totalorder %s1505_s10, %s2026_s11  ;;  %p2032_p7 = scmp.lt.s32.totalorder %s2026_s11, %s2026_s11 }
 0x1bf   :  { %1772 = vmatprep.mubr.msk.f32.mxu1 %vm919_vm1, %v2860_v29  ;;  %1325 = vrot.lane.b32.xlu0 %v2860_v29, %s2055_s5  ;;  %v868_v43 = vmul.f32 %v1945_v39, %v2554_v59 }
 0x1c0   :  { %1773 = vmatmul.mubr.msk.f32.gmra.mrb[24].mxu1 %vm919_vm1, %v2858_v54  ;;  %v2877_v25 = vadd.f32 %v869_v56, %v835_v57  ;;  %p2033_p8 = por %p2032_p7, %p2031_p6 }
 0x1c1   :  { %v1947_v28 = vpop.eup %1946  ;;  %v2879_v30 = vadd.f32 %v868_v43, %v834_v61 }
 0x1c2   :  { %v1949_v7 = vpop.eup %1948  ;;  %1331 = vrot.lane.b32.xlu1 %v2877_v25, %s2055_s5  ;;  %v871_v23 = vmul.f32 %v1947_v28, %v2554_v59  ;;  %p2034_p9 = pnand %p2033_p8, %p2027_p5 }
 0x1c3   :  { %1775 = vmatprep.mubr.msk.f32.mxu1 %vm919_vm1, %v2879_v30  ;;  %1329 = vrot.lane.b32.xlu0 %v2879_v30, %s2055_s5  ;;  %v870_v46 = vmul.f32 %v1949_v7, %v2554_v59 }
 0x1c4   :  { %1776 = vmatmul.mubr.msk.f32.gmra.mrb[26].mxu1 %vm919_vm1, %v2877_v25  ;;  %v2895_v19 = vadd.f32 %v871_v23, %v837_v62 }
 0x1c5   :  { %v2897_v6 = vadd.f32 %v870_v46, %v836_v21 }
 0x1c6   :  { %1335 = vrot.lane.b32.xlu1 %v2895_v19, %s2055_s5 }
 0x1c7   :  { %1778 = vmatprep.mubr.msk.f32.mxu1 %vm919_vm1, %v2897_v6  ;;  %1333 = vrot.lane.b32.xlu0 %v2897_v6, %s2055_s5 }
 0x1c8   :  { %1779 = vmatmul.mubr.msk.f32.gmra.mrb[28].mxu1 %vm919_vm1, %v2895_v19 }
 0x1fc   :  { %v1276_v59 = vpop.permute.xlu1 %1275 }
 0x1fd   :  { %v1274_v38 = vpop.permute.xlu0 %1273 }
 0x200   :  { %v1280_v33 = vpop.permute.xlu1 %1279 }
 0x201   :  { %v1278_v27 = vpop.permute.xlu0 %1277 }
 0x204   :  { %v2907_v45 = vpop.permute.xlu1 %1283 }
 0x205   :  { %v2909_v47 = vpop.permute.xlu0 %1281 }
 0x208   :  { %v2916_v50 = vpop.permute.xlu1 %1287 }
 0x209   :  { %v2918_v63 = vpop.permute.xlu0 %1285 }
 0x20c   :  { %v2923_v56 = vpop.permute.xlu1 %1291 }
 0x20d   :  { %v2926_v57 = vpop.permute.xlu0 %1289 }
 0x210   :  { %v2932_v28 = vpop.permute.xlu1 %1295 }
 0x211   :  { %v2934_v12 = vpop.permute.xlu0 %1293 }
 0x25f   :  { %v1735_v13 = vpop.f32.mrb[32].mxu0 }
 0x260   :  { %v1088_v51 = vadd.f32 %v1735_v13, %v2914_v58  ;;  %v1082_v37 = vpop.f32.mrb[33].mxu0 }
 0x261   :  { %v1083_v55 = vadd.f32 %v2914_v58, %v1082_v37 }
 0x262   :  { %1950 = vtanh.f32 %v1088_v51  ;;  %v1370_v51 = vsel %vm919_vm1, %v2564_v48, %v1276_v59 }
 0x263   :  { %1952 = vtanh.f32 %v1083_v55  ;;  %v1738_v22 = vpop.f32.mrb[0].mxu1  ;;  %v1369_v55 = vsel %vm919_vm1, %v2567_v53, %v1274_v38  ;;  %v2951_v53 = vpop.permute.xlu0 %1297 }
 0x264   :  { %v1098_v17 = vadd.f32 %v1738_v22, %v2914_v58  ;;  %v1092_v39 = vpop.f32.mrb[1].mxu1 }
 0x265   :  { %v1093_v34 = vadd.f32 %v2914_v58, %v1092_v39 }
 0x266   :  { %1954 = vtanh.f32 %v1098_v17 }
 0x267   :  { %1956 = vtanh.f32 %v1093_v34  ;;  %v1741_v43 = vpop.f32.mrb[2].mxu1 }
 0x268   :  { %v1108_v24 = vadd.f32 %v1741_v43, %v2914_v58  ;;  %v1102_v5 = vpop.f32.mrb[3].mxu1 }
 0x269   :  { %v1103_v61 = vadd.f32 %v2914_v58, %v1102_v5 }
 0x26a   :  { %1958 = vtanh.f32 %v1108_v24 }
 0x26b   :  { %1960 = vtanh.f32 %v1103_v61  ;;  %v1744_v7 = vpop.f32.mrb[4].mxu1  ;;  %v2945_v61 = vpop.permute.xlu1 %1299 }
 0x26c   :  { %v1951_v23 = vpop.eup %1950  ;;  %v1118_v62 = vadd.f32 %v1744_v7, %v2914_v58  ;;  %v1112_v46 = vpop.f32.mrb[5].mxu1  ;;  %v1372_v7 = vsel %vm919_vm1, %v2587_v1, %v1280_v33 }
 0x26d   :  { %v1953_v44 = vpop.eup %1952  ;;  %v1404_v21 = vmul.f32 %v1951_v23, %v2930_v60  ;;  %v1113_v13 = vadd.f32 %v2914_v58, %v1112_v46  ;;  %v1371_v23 = vsel %vm919_vm1, %v2590_v8, %v1278_v27  ;;  %v1373_v27 = vsel %vm919_vm1, %v2614_v2, %v2909_v47 }
 0x26e   :  { %v1403_v37 = vmul.f32 %v1953_v44, %v2930_v60  ;;  %1962 = vtanh.f32 %v1118_v62  ;;  %v1376_v2 = vsel %vm919_vm1, %v2633_v40, %v2916_v50 }
 0x26f   :  { %v1436_v22 = vadd.f32 %v1404_v21, %v1370_v51  ;;  %1964 = vtanh.f32 %v1113_v13  ;;  %v1747_v17 = vpop.f32.mrb[6].mxu1 }
 0x270   :  { %v1955_v39 = vpop.eup %1954  ;;  %v1435_v34 = vadd.f32 %v1403_v37, %v1369_v55  ;;  %v1128_v43 = vadd.f32 %v1747_v17, %v2914_v58  ;;  %v1122_v24 = vpop.f32.mrb[7].mxu1  ;;  %v1374_v55 = vsel %vm919_vm1, %v2611_v15, %v2907_v45 }
 0x271   :  { %v1957_v5 = vpop.eup %1956  ;;  %1468 = vst [vmem:[#allocation5 + $0x8] sm:$0xff] %v1436_v22  ;;  %v1406_v48 = vmul.f32 %v1955_v39, %v2930_v60  ;;  %v1123_v59 = vadd.f32 %v2914_v58, %v1122_v24  ;;  %v2966_v22 = vpop.permute.xlu1 %1303 }
 0x272   :  { %1467 = vst [vmem:[#allocation5] sm:$0xff] %v1435_v34  ;;  %v1405_v38 = vmul.f32 %v1957_v5, %v2930_v60  ;;  %1966 = vtanh.f32 %v1128_v43  ;;  %v2968_v43 = vpop.permute.xlu0 %1301 }
 0x273   :  { %v1438_v62 = vadd.f32 %v1406_v48, %v1372_v7  ;;  %1968 = vtanh.f32 %v1123_v59  ;;  %v1750_v46 = vpop.f32.mrb[8].mxu1  ;;  %v1375_v7 = vsel %vm919_vm1, %v2636_v9, %v2918_v63  ;;  %v1378_v9 = vsel %vm919_vm1, %v2657_v36, %v2923_v56 }
 0x274   :  { %v1959_v44 = vpop.eup %1958  ;;  %v1437_v21 = vadd.f32 %v1405_v38, %v1371_v23  ;;  %v1138_v13 = vadd.f32 %v1750_v46, %v2914_v58  ;;  %v1132_v51 = vpop.f32.mrb[9].mxu1 }
 0x275   :  { %v1961_v37 = vpop.eup %1960  ;;  %1470 = vst [vmem:[#allocation5 + $0x18] sm:$0xff] %v1438_v62  ;;  %v1408_v1 = vmul.f32 %v1959_v44, %v2930_v60  ;;  %v1133_v33 = vadd.f32 %v2914_v58, %v1132_v51  ;;  %v2981_v51 = vpop.permute.xlu1 %1307 }
 0x276   :  { %1469 = vst [vmem:[#allocation5 + $0x10] sm:$0xff] %v1437_v21  ;;  %v1407_v8 = vmul.f32 %v1961_v37, %v2930_v60  ;;  %1970 = vtanh.f32 %v1138_v13  ;;  %v2988_v63 = vpop.permute.xlu0 %1305 }
 0x277   :  { %v1440_v17 = vadd.f32 %v1408_v1, %v1374_v55  ;;  %1972 = vtanh.f32 %v1133_v33  ;;  %v1753_v39 = vpop.f32.mrb[10].mxu1  ;;  %v1377_v1 = vsel %vm919_vm1, %v2660_v10, %v2926_v57  ;;  %v1379_v57 = vsel %vm919_vm1, %v2684_v42, %v2934_v12 }
 0x278   :  { %v1963_v34 = vpop.eup %1962  ;;  %v1439_v24 = vadd.f32 %v1407_v8, %v1373_v27  ;;  %v1148_v5 = vadd.f32 %v1753_v39, %v2914_v58  ;;  %v1142_v15 = vpop.f32.mrb[11].mxu1  ;;  %v1382_v42 = vsel %vm919_vm1, %v2703_v11, %v2945_v61 }
 0x279   :  { %v1965_v45 = vpop.eup %1964  ;;  %1472 = vst [vmem:[#allocation5 + $0x28] sm:$0xff] %v1440_v17  ;;  %v1410_v48 = vmul.f32 %v1963_v34, %v2930_v60  ;;  %v1143_v59 = vadd.f32 %v2914_v58, %v1142_v15 }
 0x27a   :  { %1471 = vst [vmem:[#allocation5 + $0x20] sm:$0xff] %v1439_v24  ;;  %v1409_v47 = vmul.f32 %v1965_v45, %v2930_v60  ;;  %1974 = vtanh.f32 %v1148_v5  ;;  %v1380_v24 = vsel %vm919_vm1, %v2681_v41, %v2932_v28  ;;  %v3004_v5 = vpop.permute.xlu1 %1311 }
 0x27b   :  { %v1442_v38 = vadd.f32 %v1410_v48, %v1376_v2  ;;  %1976 = vtanh.f32 %v1143_v59  ;;  %v1756_v23 = vpop.f32.mrb[12].mxu1  ;;  %v3006_v59 = vpop.permute.xlu0 %1309 }
 0x27c   :  { %v1967_v62 = vpop.eup %1966  ;;  %v1441_v46 = vadd.f32 %v1409_v47, %v1375_v7  ;;  %v1158_v44 = vadd.f32 %v1756_v23, %v2914_v58  ;;  %v1152_v21 = vpop.f32.mrb[13].mxu1  ;;  %v1381_v23 = vsel %vm919_vm1, %v2706_v4, %v2951_v53 }
 0x27d   :  { %v1969_v13 = vpop.eup %1968  ;;  %1474 = vst [vmem:[#allocation5 + $0x38] sm:$0xff] %v1442_v38  ;;  %v1412_v40 = vmul.f32 %v1967_v62, %v2930_v60  ;;  %v1153_v50 = vadd.f32 %v2914_v58, %v1152_v21 }
 0x27e   :  { %1473 = vst [vmem:[#allocation5 + $0x30] sm:$0xff] %v1441_v46  ;;  %v1411_v37 = vmul.f32 %v1969_v13, %v2930_v60  ;;  %1978 = vtanh.f32 %v1158_v44 }
 0x27f   :  { %v1444_v33 = vadd.f32 %v1412_v40, %v1378_v9  ;;  %1980 = vtanh.f32 %v1153_v50  ;;  %v1759_v55 = vpop.f32.mrb[14].mxu1  ;;  %v1316_v9 = vpop.permute.xlu1 %1315 }
 0x280   :  { %v1971_v8 = vpop.eup %1970  ;;  %v1443_v27 = vadd.f32 %v1411_v37, %v1377_v1  ;;  %v1168_v17 = vadd.f32 %v1759_v55, %v2914_v58  ;;  %v1162_v39 = vpop.f32.mrb[15].mxu1  ;;  %v1384_v37 = vsel %vm919_vm1, %v2727_v20, %v2966_v22  ;;  %v1383_v1 = vsel %vm919_vm1, %v2730_v16, %v2968_v43 }
 0x281   :  { %v1973_v34 = vpop.eup %1972  ;;  %1476 = vst [vmem:[#allocation5 + $0x48] sm:$0xff] %v1444_v33  ;;  %v1414_v36 = vmul.f32 %v1971_v8, %v2930_v60  ;;  %v1163_v56 = vadd.f32 %v2914_v58, %v1162_v39  ;;  %v1314_v4 = vpop.permute.xlu0 %1313  ;;  %v1385_v43 = vsel %vm919_vm1, %v2754_v14, %v2988_v63  ;;  %v1388_v14 = vsel %vm919_vm1, %v2773_v31, %v3004_v5 }
 0x282   :  { %1475 = vst [vmem:[#allocation5 + $0x40] sm:$0xff] %v1443_v27  ;;  %v1413_v10 = vmul.f32 %v1973_v34, %v2930_v60  ;;  %1982 = vtanh.f32 %v1168_v17 }
 0x283   :  { %v1446_v15 = vadd.f32 %v1414_v36, %v1380_v24  ;;  %1984 = vtanh.f32 %v1163_v56  ;;  %v1762_v45 = vpop.f32.mrb[16].mxu1  ;;  %v1386_v36 = vsel %vm919_vm1, %v2751_v3, %v2981_v51  ;;  %v1320_v56 = vpop.permute.xlu1 %1319 }
 0x284   :  { %v1975_v48 = vpop.eup %1974  ;;  %v1445_v2 = vadd.f32 %v1413_v10, %v1379_v57  ;;  %v1178_v47 = vadd.f32 %v1762_v45, %v2914_v58  ;;  %v1172_v41 = vpop.f32.mrb[17].mxu1 }
 0x285   :  { %v1977_v28 = vpop.eup %1976  ;;  %1478 = vst [vmem:[#allocation5 + $0x58] sm:$0xff] %v1446_v15  ;;  %v1416_v7 = vmul.f32 %v1975_v48, %v2930_v60  ;;  %v1173_v38 = vadd.f32 %v2914_v58, %v1172_v41  ;;  %v1318_v15 = vpop.permute.xlu0 %1317  ;;  %v1387_v41 = vsel %vm919_vm1, %v2776_v52, %v3006_v59  ;;  %v1389_v59 = vsel %vm919_vm1, %v2798_v0, %v1314_v4 }
 0x286   :  { %1477 = vst [vmem:[#allocation5 + $0x50] sm:$0xff] %v1445_v2  ;;  %v1415_v12 = vmul.f32 %v1977_v28, %v2930_v60  ;;  %1986 = vtanh.f32 %v1178_v47  ;;  %v1391_v4 = vsel %vm919_vm1, %v2820_v26, %v1318_v15 }
 0x287   :  { %v1448_v62 = vadd.f32 %v1416_v7, %v1382_v42  ;;  %1988 = vtanh.f32 %v1173_v38  ;;  %v1765_v46 = vpop.f32.mrb[18].mxu1 }
 0x288   :  { %v1979_v44 = vpop.eup %1978  ;;  %v1447_v21 = vadd.f32 %v1415_v12, %v1381_v23  ;;  %v1188_v13 = vadd.f32 %v1765_v46, %v2914_v58  ;;  %v1182_v40 = vpop.f32.mrb[19].mxu1 }
 0x289   :  { %v1981_v50 = vpop.eup %1980  ;;  %1480 = vst [vmem:[#allocation5 + $0x68] sm:$0xff] %v1448_v62  ;;  %v1418_v11 = vmul.f32 %v1979_v44, %v2930_v60  ;;  %v1183_v61 = vadd.f32 %v2914_v58, %v1182_v40  ;;  %v1324_v46 = vpop.permute.xlu1 %1323  ;;  %v1390_v44 = vsel %vm919_vm1, %v2795_v18, %v1316_v9 }
 0x28a   :  { %1479 = vst [vmem:[#allocation5 + $0x60] sm:$0xff] %v1447_v21  ;;  %v1417_v53 = vmul.f32 %v1981_v50, %v2930_v60  ;;  %1990 = vtanh.f32 %v1188_v13  ;;  %v1322_v21 = vpop.permute.xlu0 %1321 }
 0x28b   :  { %v1450_v33 = vadd.f32 %v1418_v11, %v1384_v37  ;;  %1992 = vtanh.f32 %v1183_v61  ;;  %v1768_v55 = vpop.f32.mrb[20].mxu1 }
 0x28c   :  { %v1983_v8 = vpop.eup %1982  ;;  %v1449_v27 = vadd.f32 %v1417_v53, %v1383_v1  ;;  %v1198_v17 = vadd.f32 %v1768_v55, %v2914_v58  ;;  %v1192_v39 = vpop.f32.mrb[21].mxu1  ;;  %v1392_v1 = vsel %vm919_vm1, %v2817_v35, %v1320_v56 }
 0x28d   :  { %v1985_v34 = vpop.eup %1984  ;;  %1482 = vst [vmem:[#allocation5 + $0x78] sm:$0xff] %v1450_v33  ;;  %v1420_v20 = vmul.f32 %v1983_v8, %v2930_v60  ;;  %v1193_v22 = vadd.f32 %v2914_v58, %v1192_v39  ;;  %v1328_v33 = vpop.permute.xlu1 %1327 }
 0x28e   :  { %1481 = vst [vmem:[#allocation5 + $0x70] sm:$0xff] %v1449_v27  ;;  %v1419_v16 = vmul.f32 %v1985_v34, %v2930_v60  ;;  %1994 = vtanh.f32 %v1198_v17  ;;  %v1326_v17 = vpop.permute.xlu0 %1325 }
 0x28f   :  { %v1452_v24 = vadd.f32 %v1420_v20, %v1386_v36  ;;  %1996 = vtanh.f32 %v1193_v22  ;;  %v1771_v10 = vpop.f32.mrb[22].mxu1 }
 0x290   :  { %v1987_v57 = vpop.eup %1986  ;;  %v1451_v45 = vadd.f32 %v1419_v16, %v1385_v43  ;;  %v1208_v48 = vadd.f32 %v1771_v10, %v2914_v58  ;;  %v1202_v2 = vpop.f32.mrb[23].mxu1  ;;  %v1394_v16 = vsel %vm919_vm1, %v2839_v49, %v1324_v46  ;;  %v1393_v43 = vsel %vm919_vm1, %v2841_v32, %v1322_v21 }
 0x291   :  { %v1989_v47 = vpop.eup %1988  ;;  %1484 = vst [vmem:[#allocation5 + $0x88] sm:$0xff] %v1452_v24  ;;  %v1422_v3 = vmul.f32 %v1987_v57, %v2930_v60  ;;  %v1203_v51 = vadd.f32 %v2914_v58, %v1202_v2  ;;  %v1332_v15 = vpop.permute.xlu1 %1331  ;;  %v1395_v2 = vsel %vm919_vm1, %v2860_v29, %v1326_v17 }
 0x292   :  { %1483 = vst [vmem:[#allocation5 + $0x80] sm:$0xff] %v1451_v45  ;;  %v1421_v63 = vmul.f32 %v1989_v47, %v2930_v60  ;;  %1998 = vtanh.f32 %v1208_v48  ;;  %v1330_v49 = vpop.permute.xlu0 %1329 }
 0x293   :  { %v1454_v28 = vadd.f32 %v1422_v3, %v1388_v14  ;;  %2000 = vtanh.f32 %v1203_v51  ;;  %v1774_v7 = vpop.f32.mrb[24].mxu1 }
 0x294   :  { %v1991_v38 = vpop.eup %1990  ;;  %v1453_v42 = vadd.f32 %v1421_v63, %v1387_v41  ;;  %v1218_v12 = vadd.f32 %v1774_v7, %v2914_v58  ;;  %v1212_v23 = vpop.f32.mrb[25].mxu1  ;;  %v1398_v63 = vsel %vm919_vm1, %v2877_v25, %v1332_v15  ;;  %v1397_v41 = vsel %vm919_vm1, %v2879_v30, %v1330_v49 }
 0x295   :  { %v1993_v62 = vpop.eup %1992  ;;  %1486 = vst [vmem:[#allocation5 + $0x98] sm:$0xff] %v1454_v28  ;;  %v1424_v31 = vmul.f32 %v1991_v38, %v2930_v60  ;;  %v1213_v5 = vadd.f32 %v2914_v58, %v1212_v23  ;;  %v1336_v28 = vpop.permute.xlu1 %1335 }
 0x296   :  { %1485 = vst [vmem:[#allocation5 + $0x90] sm:$0xff] %v1453_v42  ;;  %v1423_v52 = vmul.f32 %v1993_v62, %v2930_v60  ;;  %2002 = vtanh.f32 %v1218_v12  ;;  %v1334_v29 = vpop.permute.xlu0 %1333  ;;  %v1400_v25 = vsel %vm919_vm1, %v2895_v19, %v1336_v28 }
 0x297   :  { %v1456_v13 = vadd.f32 %v1424_v31, %v1390_v44  ;;  %2004 = vtanh.f32 %v1213_v5  ;;  %v1777_v40 = vpop.f32.mrb[26].mxu1  ;;  %v1399_v30 = vsel %vm919_vm1, %v2897_v6, %v1334_v29 }
 0x298   :  { %v1995_v50 = vpop.eup %1994  ;;  %v1455_v11 = vadd.f32 %v1423_v52, %v1389_v59  ;;  %v1228_v61 = vadd.f32 %v1777_v40, %v2914_v58  ;;  %v1222_v37 = vpop.f32.mrb[27].mxu1 }
 0x299   :  { %v1997_v53 = vpop.eup %1996  ;;  %1488 = vst [vmem:[#allocation5 + $0xa8] sm:$0xff] %v1456_v13  ;;  %v1426_v18 = vmul.f32 %v1995_v50, %v2930_v60  ;;  %v1223_v9 = vadd.f32 %v2914_v58, %v1222_v37 }
 0x29a   :  { %1487 = vst [vmem:[#allocation5 + $0xa0] sm:$0xff] %v1455_v11  ;;  %v1425_v0 = vmul.f32 %v1997_v53, %v2930_v60  ;;  %2006 = vtanh.f32 %v1228_v61 }
 0x29b   :  { %v1458_v55 = vadd.f32 %v1426_v18, %v1392_v1  ;;  %2008 = vtanh.f32 %v1223_v9  ;;  %v1780_v8 = vpop.f32.mrb[28].mxu1 }
 0x29c   :  { %v1999_v27 = vpop.eup %1998  ;;  %v1457_v39 = vadd.f32 %v1425_v0, %v1391_v4  ;;  %v1238_v34 = vadd.f32 %v1780_v8, %v2914_v58  ;;  %v1232_v20 = vpop.f32.mrb[29].mxu1 }
 0x29d   :  { %v2001_v22 = vpop.eup %2000  ;;  %1490 = vst [vmem:[#allocation5 + $0xb8] sm:$0xff] %v1458_v55  ;;  %v1428_v35 = vmul.f32 %v1999_v27, %v2930_v60  ;;  %v1233_v36 = vadd.f32 %v2914_v58, %v1232_v20  ;;  %v1396_v58 = vsel %vm919_vm1, %v2858_v54, %v1328_v33 }
 0x29e   :  { %1489 = vst [vmem:[#allocation5 + $0xb0] sm:$0xff] %v1457_v39  ;;  %v1427_v26 = vmul.f32 %v2001_v22, %v2930_v60  ;;  %2010 = vtanh.f32 %v1238_v34 }
 0x29f   :  { %v1460_v56 = vadd.f32 %v1428_v35, %v1394_v16  ;;  %2012 = vtanh.f32 %v1233_v36 }
 0x2a0   :  { %v2003_v24 = vpop.eup %2002  ;;  %v1459_v10 = vadd.f32 %v1427_v26, %v1393_v43 }
 0x2a1   :  { %v2005_v57 = vpop.eup %2004  ;;  %1492 = vst [vmem:[#allocation5 + $0xc8] sm:$0xff] %v1460_v56  ;;  %v1430_v45 = vmul.f32 %v2003_v24, %v2930_v60 }
 0x2a2   :  { %1491 = vst [vmem:[#allocation5 + $0xc0] sm:$0xff] %v1459_v10  ;;  %v1429_v48 = vmul.f32 %v2005_v57, %v2930_v60 }
 0x2a3   :  { %v1462_v32 = vadd.f32 %v1430_v45, %v1396_v58 }
 0x2a4   :  { %v2007_v47 = vpop.eup %2006  ;;  %v1461_v3 = vadd.f32 %v1429_v48, %v1395_v2 }
 0x2a5   :  { %v2009_v51 = vpop.eup %2008  ;;  %1494 = vst [vmem:[#allocation5 + $0xd8] sm:$0xff] %v1462_v32  ;;  %v1432_v14 = vmul.f32 %v2007_v47, %v2930_v60 }
 0x2a6   :  { %1493 = vst [vmem:[#allocation5 + $0xd0] sm:$0xff] %v1461_v3  ;;  %v1431_v54 = vmul.f32 %v2009_v51, %v2930_v60 }
 0x2a7   :  { %v1464_v7 = vadd.f32 %v1432_v14, %v1398_v63 }
 0x2a8   :  { %v2011_v38 = vpop.eup %2010  ;;  %v1463_v42 = vadd.f32 %v1431_v54, %v1397_v41 }
 0x2a9   :  { %v2013_v12 = vpop.eup %2012  ;;  %1496 = vst [vmem:[#allocation5 + $0xe8] sm:$0xff] %v1464_v7  ;;  %v1434_v23 = vmul.f32 %v2011_v38, %v2930_v60 }
 0x2aa   :  { %1495 = vst [vmem:[#allocation5 + $0xe0] sm:$0xff] %v1463_v42  ;;  %v1433_v62 = vmul.f32 %v2013_v12, %v2930_v60 }
 0x2ab   :  { %v1466_v46 = vadd.f32 %v1434_v23, %v1400_v25 }
 0x2ac   :  { %v1465_v31 = vadd.f32 %v1433_v62, %v1399_v30 }
 0x2ad   :  { %1498 = vst [vmem:[#allocation5 + $0xf8] sm:$0xff] %v1466_v46 }
 0x2ae   :  { %1497 = vst [vmem:[#allocation5 + $0xf0] sm:$0xff] %v1465_v31 }
 0x2af   :  { %2037 = shalt.err (!%p2034_p9)
}
 0x2b0   :  { %s2038_s7 = scalar_lea.hbm %s3110_s8, 4096 }
 0x2b1   :  { %p2039_p10 = scmp.ne.s32.totalorder %s3110_s8, %s2038_s7  ;;  %p2042_p11 = scmp.lt.u32.totalorder %s2038_s7, %s3110_s8 }
 0x2b3   :  { %p2044_p12 = pnand %p2042_p11, %p2039_p10 }
 0x2b5   :  { %2047 = shalt.err (!%p2044_p12)
}
 0x2b6   :  { %s2057_s15 = smov 128   ;;  %s2058_s16 = smov 8  }
 0x2b7   :  { %1510 = dma.vmem_to_hbm [thread:$0]  %s1505_s10, 4096, %s3110_s8, [#allocation3], %s2057_s15, %s2057_s15, %s2058_s16  }
 0x2b8   :  { %2050 = dma.done.wait [#allocation3], 4096  }
 0x2b9   :  { %2051 = vsyncadd [#allocation3], 4294963200 }
 0x2ba   :  { %1514 = vsyncpa [#allocation3], 1 }
 0x2bb   :  { %1515 = vsyncpa [#allocation4], 1 }

</bundles_post_ra>
